<compile_context>
chip_gen: v7x
topology: tpu7x:2x2x1
jax: 0.10.0
libtpu: 0.0.40
codegen_flags: <defaults>
</compile_context>

<pallas_src>
import functools

import jax
import jax.numpy as jnp
from jax.experimental import pallas as pl
from jax.experimental.pallas import tpu as pltpu


# ----------------------------------------------------------------------------
# Pallas kernel: full LSTM recurrence + final linear projection in VMEM.
# ----------------------------------------------------------------------------
def _hft_lstm_kernel(x_ref,      # (T*Bp, Fp)  time-major input, flattened
                     wih1_ref,   # (Fp, 4H)    layer-0 input weights, cols (i,f,o,g)
                     b1_ref,     # (1, 4H)     bias_ih_l0 + bias_hh_l0, reordered
                     wf_ref,     # (2H, 8H)    wavefront-fused stationary weight
                     b2_ref,     # (1, 4H)     bias_ih_l1 + bias_hh_l1, reordered
                     wfc_ref,    # (1, H)      fc weight row
                     bfc_ref,    # (1, 1)
                     out_ref,    # (Bp, 1)
                     xp_ref):    # VMEM scratch (T*Bp, 4H): layer-0 input projection
    Bp = out_ref.shape[0]
    H = wfc_ref.shape[1]
    T = x_ref.shape[0] // Bp
    G = 4 * H

    # ---- layer-0 input projection hoisted off the recurrence ---------------
    # One (T*Bp, Fp) @ (Fp, 4H) matmul with the layer-0 bias folded in, staged
    # to VMEM scratch so per-step reads are aligned Bp-row vlds (co-issue with
    # the MXU push) instead of a live 16-vreg value held across the loop.
    xp_ref[...] = (jnp.dot(x_ref[...], wih1_ref[...],
                           preferred_element_type=jnp.float32)
                   + b1_ref[...])

    # Hoist the (1,4H)->(Bp,4H) layer-1 bias broadcast once (JAX does not CSE
    # broadcast_in_dim inside the unrolled loop).
    b2 = jnp.broadcast_to(b2_ref[...], (Bp, G))

    def lstm_cell(gates, c):
        # Gate column order is (i, f, o, g): one contiguous sigmoid over the
        # first 3H lanes + one tanh over the last H lanes (2 EUP ops / cell).
        ifo = jax.nn.sigmoid(gates[:, :3 * H])
        g = jnp.tanh(gates[:, 3 * H:])
        i, f, o = ifo[:, 0:H], ifo[:, H:2 * H], ifo[:, 2 * H:3 * H]
        c_new = f * c + i * g
        h_new = o * jnp.tanh(c_new)
        return h_new, c_new

    zeros = jnp.zeros((Bp, H), jnp.float32)

    # Prologue: layer-0 step 0 (h1[-1] == 0, so its gates are just x_proj[0]).
    h1, c1 = lstm_cell(xp_ref[pl.ds(0, Bp), :], zeros)
    h2, c2 = zeros, zeros

    # ---- wavefront recurrence: ONE matmul per timestep ---------------------
    #   fused[:, :4H] = h1[t]   @ Whh_l0^T                 (layer-0 step t+1)
    #   fused[:, 4H:] = h1[t]   @ Wih_l1^T
    #                 + h2[t-1] @ Whh_l1^T                 (layer-1 step t)
    # The two cell updates after the matmul are independent of each other, so
    # their EUP/VPU work co-schedules.  T is small and static: fully unroll.
    # TODO(synk): stage wf_ref in the MXU across the unrolled steps via
    # pltpu.matmul_push_rhs/acc_lhs/pop (and on v7x accumulate the two halves
    # in the MRB to drop the concatenate) if the bundle dump shows the
    # stationary weight being re-pushed every iteration.
    for t in range(T):
        hcat = jnp.concatenate([h1, h2], axis=-1)             # (Bp, 2H)
        fused = jnp.dot(hcat, wf_ref[...],
                        preferred_element_type=jnp.float32)   # (Bp, 8H)
        # Layer-1 cell at step t.
        h2, c2 = lstm_cell(fused[:, G:] + b2, c2)
        # Layer-0 cell at step t+1 (not needed after the last step).
        if t + 1 < T:
            h1, c1 = lstm_cell(xp_ref[pl.ds((t + 1) * Bp, Bp), :]
                               + fused[:, :G], c1)

    # Final fc head on h2[T-1]: VPU multiply + XLU lane reduction keeps the
    # N=1 tail off the MXU (no fill/drain for a 1-column matmul).
    wrow = jnp.broadcast_to(wfc_ref[...], (Bp, H))
    out_ref[...] = (jnp.sum(h2 * wrow, axis=-1, keepdims=True)
                    + bfc_ref[...])


# ----------------------------------------------------------------------------
# One-time parameter packing (out of the per-call hot path).
# ----------------------------------------------------------------------------
def _reorder_gate_rows(w, H):
    """PyTorch LSTM gate block order is (i, f, g, o); reorder to (i, f, o, g).

    Works on (4H, K) weights and (4H,) biases alike (leading axis is gates).
    """
    i, f, g, o = w[0 * H:1 * H], w[1 * H:2 * H], w[2 * H:3 * H], w[3 * H:4 * H]
    return jnp.concatenate([i, f, o, g], axis=0)


def prepare_params(params, hidden_size=64):
    """Gate reorder, transposes, bias sums, wavefront fusion, feature padding.

    Call once; pass the result to hft_lstm_forward on every call.
    """
    H = hidden_size
    F = params["weight_ih_l0"].shape[1]
    Fp = max(8, ((F + 7) // 8) * 8)

    # Layer 0: (Fp, 4H) input weights (zero rows for padded features) + bias.
    wih1 = jnp.pad(_reorder_gate_rows(params["weight_ih_l0"], H).T,
                   ((0, Fp - F), (0, 0))).astype(jnp.float32)       # (Fp, 4H)
    b1 = _reorder_gate_rows(params["bias_ih_l0"] + params["bias_hh_l0"],
                            H).reshape(1, 4 * H).astype(jnp.float32)

    whh1_t = _reorder_gate_rows(params["weight_hh_l0"], H).T        # (H, 4H)
    wih2_t = _reorder_gate_rows(params["weight_ih_l1"], H).T        # (H, 4H)
    whh2_t = _reorder_gate_rows(params["weight_hh_l1"], H).T        # (H, 4H)

    # Wavefront-fused stationary weight (2H, 8H):
    #   [h1[t], h2[t-1]] @ wf = [ h1[t]@Whh_l0^T | h1[t]@Wih_l1^T + h2[t-1]@Whh_l1^T ]
    wf = jnp.concatenate(
        [jnp.concatenate([whh1_t, wih2_t], axis=1),
         jnp.concatenate([jnp.zeros((H, 4 * H), jnp.float32), whh2_t], axis=1)],
        axis=0).astype(jnp.float32)                                  # (2H, 8H)

    b2 = _reorder_gate_rows(params["bias_ih_l1"] + params["bias_hh_l1"],
                            H).reshape(1, 4 * H).astype(jnp.float32)
    wfc = params["fc_weight"].reshape(1, H).astype(jnp.float32)      # (1, H)
    bfc = params["fc_bias"].reshape(1, 1).astype(jnp.float32)        # (1, 1)

    return {"wih1": wih1, "b1": b1, "wf": wf, "b2": b2,
            "wfc": wfc, "bfc": bfc}


# ----------------------------------------------------------------------------
# Jitted forward: pad/transpose the input and call the kernel.
# ----------------------------------------------------------------------------
@functools.partial(jax.jit, static_argnames=("hidden_size",))
def hft_lstm_forward(x, packed, hidden_size=64):
    """x: (B, T, F) float32, batch_first like the PyTorch module."""
    B, T, F = x.shape
    H = hidden_size
    Fp = packed["wih1"].shape[0]
    Bp = max(8, ((B + 7) // 8) * 8)      # pad batch to a sublane tile

    x_pad = jnp.pad(x.astype(jnp.float32),
                    ((0, Bp - B), (0, 0), (0, Fp - F)))
    # Time-major, flattened to (T*Bp, Fp): row t*Bp + b == (timestep t, batch b).
    x2d = jnp.transpose(x_pad, (1, 0, 2)).reshape(T * Bp, Fp)

    vmem = pltpu.MemorySpace.VMEM
    args = (x2d, packed["wih1"], packed["b1"], packed["wf"],
            packed["b2"], packed["wfc"], packed["bfc"])

    # TODO(synk): for large B, add a batch-tile grid axis with
    # dimension_semantics=("parallel",) (2 TCs on v7x) and size blocks against
    # v7x's 64 MiB VMEM; unnecessary at this size (<0.5 MiB resident).
    out = pl.pallas_call(
        _hft_lstm_kernel,
        out_shape=jax.ShapeDtypeStruct((Bp, 1), jnp.float32),
        in_specs=[pl.BlockSpec(memory_space=vmem) for _ in args],
        out_specs=pl.BlockSpec(memory_space=vmem),
        scratch_shapes=[pltpu.VMEM((T * Bp, 4 * H), jnp.float32)],
    )(*args)
    return out[:B]


# ----------------------------------------------------------------------------
# Deterministic parameter init (PyTorch-style uniform(-1/sqrt(H), 1/sqrt(H))).
# ----------------------------------------------------------------------------
def init_params(key, input_size, hidden_size):
    H = hidden_size
    bound = 1.0 / jnp.sqrt(H)
    shapes = {
        "weight_ih_l0": (4 * H, input_size),
        "weight_hh_l0": (4 * H, H),
        "bias_ih_l0": (4 * H,),
        "bias_hh_l0": (4 * H,),
        "weight_ih_l1": (4 * H, H),
        "weight_hh_l1": (4 * H, H),
        "bias_ih_l1": (4 * H,),
        "bias_hh_l1": (4 * H,),
        "fc_weight": (1, H),
        "fc_bias": (1,),
    }
    params = {}
    for name, shape in shapes.items():
        key, sub = jax.random.split(key)
        params[name] = jax.random.uniform(
            sub, shape, jnp.float32, minval=-bound, maxval=bound)
    return params


# ----------------------------------------------------------------------------
# Pure-JAX reference of the PyTorch forward pass (original gate order).
# ----------------------------------------------------------------------------
def reference_forward(x, params, hidden_size=64):
    H = hidden_size
    B, T, _ = x.shape

    def cell(x_in, h, c, wih, whh, bih, bhh):
        g = x_in @ wih.T + h @ whh.T + bih + bhh
        i = jax.nn.sigmoid(g[:, 0 * H:1 * H])
        f = jax.nn.sigmoid(g[:, 1 * H:2 * H])
        gg = jnp.tanh(g[:, 2 * H:3 * H])
        o = jax.nn.sigmoid(g[:, 3 * H:4 * H])
        c = f * c + i * gg
        h = o * jnp.tanh(c)
        return h, c

    h1 = c1 = h2 = c2 = jnp.zeros((B, H), jnp.float32)
    for t in range(T):
        x_t = x[:, t, :]
        h1, c1 = cell(x_t, h1, c1, params["weight_ih_l0"],
                      params["weight_hh_l0"], params["bias_ih_l0"],
                      params["bias_hh_l0"])
        h2, c2 = cell(h1, h2, c2, params["weight_ih_l1"],
                      params["weight_hh_l1"], params["bias_ih_l1"],
                      params["bias_hh_l1"])
    return h2 @ params["fc_weight"].T + params["fc_bias"]


if __name__ == "__main__":
    INPUT_SIZE = 5   # ['best_bid', 'best_ask', 'bid_volume', 'ask_volume', 'spread']
    HIDDEN = 64
    B, T = 2, 8

    key = jax.random.PRNGKey(0)
    key, kx = jax.random.split(key)
    x = jax.random.normal(kx, (B, T, INPUT_SIZE), jnp.float32)
    params = init_params(key, INPUT_SIZE, HIDDEN)

    packed = prepare_params(params, hidden_size=HIDDEN)   # one-time packing
    out = hft_lstm_forward(x, packed, hidden_size=HIDDEN)
    out = jax.block_until_ready(out)

    ref = reference_forward(x, params, hidden_size=HIDDEN)
    assert out.shape == (B, 1), out.shape
    assert jnp.allclose(out, ref, atol=2e-4, rtol=2e-4), (out, ref)

    print("KERNEL_OK")
</pallas_src>

<mosaic_0001>
module attributes {stable_mosaic.version = 11 : i64} {
  func.func @_hft_lstm_kernel(%arg0: memref<64x8xf32, #tpu.memory_space<vmem>>, %arg1: memref<8x256xf32, #tpu.memory_space<vmem>>, %arg2: memref<1x256xf32, #tpu.memory_space<vmem>>, %arg3: memref<128x512xf32, #tpu.memory_space<vmem>>, %arg4: memref<1x256xf32, #tpu.memory_space<vmem>>, %arg5: memref<1x64xf32, #tpu.memory_space<vmem>>, %arg6: memref<1x1xf32, #tpu.memory_space<vmem>>, %arg7: memref<8x1xf32, #tpu.memory_space<vmem>>, %arg8: memref<64x256xf32, #tpu.memory_space<vmem>>) attributes {dimension_semantics = [], scalar_prefetch = 0 : i64, scratch_operands = 1 : i64, tpu.core_type = #tpu.core_type<tc>} {
    %c0 = arith.constant 0 : index
    %c0_0 = arith.constant 0 : index
    %0 = vector.load %arg0[%c0, %c0_0] : memref<64x8xf32, #tpu.memory_space<vmem>>, vector<64x8xf32>
    %c0_1 = arith.constant 0 : index
    %c0_2 = arith.constant 0 : index
    %1 = vector.load %arg1[%c0_1, %c0_2] : memref<8x256xf32, #tpu.memory_space<vmem>>, vector<8x256xf32>
    %cst = arith.constant dense<0.000000e+00> : vector<64x256xf32>
    %2 = tpu.matmul %0, %1, %cst {dimension_numbers = #tpu.dot_dimension_numbers<[1], [0], [0], [1], [0, 0, 1, 1], [], []>} : vector<64x8xf32>, vector<8x256xf32>, vector<64x256xf32> -> vector<64x256xf32>
    %c0_3 = arith.constant 0 : index
    %c0_4 = arith.constant 0 : index
    %3 = vector.load %arg2[%c0_3, %c0_4] : memref<1x256xf32, #tpu.memory_space<vmem>>, vector<1x256xf32>
    %4 = vector.broadcast %3 : vector<1x256xf32> to vector<64x256xf32>
    %5 = arith.addf %2, %4 : vector<64x256xf32>
    %c0_5 = arith.constant 0 : index
    %c0_6 = arith.constant 0 : index
    %6 = vector.load %arg8[%c0_5, %c0_6] : memref<64x256xf32, #tpu.memory_space<vmem>>, vector<64x256xf32>
    tpu.vector_store %arg8[%c0_5, %c0_6], %5 {strides = array<i32>} : memref<64x256xf32, #tpu.memory_space<vmem>>, vector<64x256xf32>,
    %c0_7 = arith.constant 0 : index
    %c0_8 = arith.constant 0 : index
    %7 = vector.load %arg4[%c0_7, %c0_8] : memref<1x256xf32, #tpu.memory_space<vmem>>, vector<1x256xf32>
    %8 = vector.shape_cast %7 : vector<1x256xf32> to vector<1x256xf32>
    %9 = vector.broadcast %8 : vector<1x256xf32> to vector<8x256xf32>
    %cst_9 = arith.constant 0.000000e+00 : f32
    %10 = vector.broadcast %cst_9 : f32 to vector<8x64xf32>
    %c0_10 = arith.constant 0 : index
    %c0_11 = arith.constant 0 : index
    %11 = vector.load %arg8[%c0_10, %c0_11] : memref<64x256xf32, #tpu.memory_space<vmem>>, vector<8x256xf32>
    %12 = vector.extract_strided_slice %11 {offsets = [0, 0], sizes = [8, 192], strides = [1, 1]} : vector<8x256xf32> to vector<8x192xf32>
    %13 = arith.negf %12 : vector<8x192xf32>
    %14 = math.exp %13 : vector<8x192xf32>
    %cst_12 = arith.constant 1.000000e+00 : f32
    %15 = vector.broadcast %cst_12 : f32 to vector<8x192xf32>
    %16 = arith.addf %15, %14 : vector<8x192xf32>
    %17 = arith.divf %15, %16 : vector<8x192xf32>
    %18 = vector.extract_strided_slice %11 {offsets = [0, 192], sizes = [8, 64], strides = [1, 1]} : vector<8x256xf32> to vector<8x64xf32>
    %19 = math.tanh %18 : vector<8x64xf32>
    %20 = vector.extract_strided_slice %17 {offsets = [0, 0], sizes = [8, 64], strides = [1, 1]} : vector<8x192xf32> to vector<8x64xf32>
    %21 = vector.extract_strided_slice %17 {offsets = [0, 64], sizes = [8, 64], strides = [1, 1]} : vector<8x192xf32> to vector<8x64xf32>
    %22 = vector.extract_strided_slice %17 {offsets = [0, 128], sizes = [8, 64], strides = [1, 1]} : vector<8x192xf32> to vector<8x64xf32>
    %23 = arith.mulf %21, %10 : vector<8x64xf32>
    %24 = arith.mulf %20, %19 : vector<8x64xf32>
    %25 = arith.addf %23, %24 : vector<8x64xf32>
    %26 = math.tanh %25 : vector<8x64xf32>
    %27 = arith.mulf %22, %26 : vector<8x64xf32>
    %28 = tpu.concatenate %27, %10 in 1 : vector<8x64xf32>, vector<8x64xf32> -> vector<8x128xf32>
    %c0_13 = arith.constant 0 : index
    %c0_14 = arith.constant 0 : index
    %29 = vector.load %arg3[%c0_13, %c0_14] : memref<128x512xf32, #tpu.memory_space<vmem>>, vector<128x512xf32>
    %cst_15 = arith.constant dense<0.000000e+00> : vector<8x512xf32>
    %30 = tpu.matmul %28, %29, %cst_15 {dimension_numbers = #tpu.dot_dimension_numbers<[1], [0], [0], [1], [0, 0, 1, 1], [], []>} : vector<8x128xf32>, vector<128x512xf32>, vector<8x512xf32> -> vector<8x512xf32>
    %31 = vector.extract_strided_slice %30 {offsets = [0, 256], sizes = [8, 256], strides = [1, 1]} : vector<8x512xf32> to vector<8x256xf32>
    %32 = arith.addf %31, %9 : vector<8x256xf32>
    %33 = vector.extract_strided_slice %32 {offsets = [0, 0], sizes = [8, 192], strides = [1, 1]} : vector<8x256xf32> to vector<8x192xf32>
    %34 = arith.negf %33 : vector<8x192xf32>
    %35 = math.exp %34 : vector<8x192xf32>
    %cst_16 = arith.constant 1.000000e+00 : f32
    %36 = vector.broadcast %cst_16 : f32 to vector<8x192xf32>
    %37 = arith.addf %36, %35 : vector<8x192xf32>
    %38 = arith.divf %36, %37 : vector<8x192xf32>
    %39 = vector.extract_strided_slice %32 {offsets = [0, 192], sizes = [8, 64], strides = [1, 1]} : vector<8x256xf32> to vector<8x64xf32>
    %40 = math.tanh %39 : vector<8x64xf32>
    %41 = vector.extract_strided_slice %38 {offsets = [0, 0], sizes = [8, 64], strides = [1, 1]} : vector<8x192xf32> to vector<8x64xf32>
    %42 = vector.extract_strided_slice %38 {offsets = [0, 64], sizes = [8, 64], strides = [1, 1]} : vector<8x192xf32> to vector<8x64xf32>
    %43 = vector.extract_strided_slice %38 {offsets = [0, 128], sizes = [8, 64], strides = [1, 1]} : vector<8x192xf32> to vector<8x64xf32>
    %44 = arith.mulf %42, %10 : vector<8x64xf32>
    %45 = arith.mulf %41, %40 : vector<8x64xf32>
    %46 = arith.addf %44, %45 : vector<8x64xf32>
    %47 = math.tanh %46 : vector<8x64xf32>
    %48 = arith.mulf %43, %47 : vector<8x64xf32>
    %c8 = arith.constant 8 : index
    %c0_17 = arith.constant 0 : index
    %49 = vector.load %arg8[%c8, %c0_17] : memref<64x256xf32, #tpu.memory_space<vmem>>, vector<8x256xf32>
    %50 = vector.extract_strided_slice %30 {offsets = [0, 0], sizes = [8, 256], strides = [1, 1]} : vector<8x512xf32> to vector<8x256xf32>
    %51 = arith.addf %49, %50 : vector<8x256xf32>
    %52 = vector.extract_strided_slice %51 {offsets = [0, 0], sizes = [8, 192], strides = [1, 1]} : vector<8x256xf32> to vector<8x192xf32>
    %53 = arith.negf %52 : vector<8x192xf32>
    %54 = math.exp %53 : vector<8x192xf32>
    %cst_18 = arith.constant 1.000000e+00 : f32
    %55 = vector.broadcast %cst_18 : f32 to vector<8x192xf32>
    %56 = arith.addf %55, %54 : vector<8x192xf32>
    %57 = arith.divf %55, %56 : vector<8x192xf32>
    %58 = vector.extract_strided_slice %51 {offsets = [0, 192], sizes = [8, 64], strides = [1, 1]} : vector<8x256xf32> to vector<8x64xf32>
    %59 = math.tanh %58 : vector<8x64xf32>
    %60 = vector.extract_strided_slice %57 {offsets = [0, 0], sizes = [8, 64], strides = [1, 1]} : vector<8x192xf32> to vector<8x64xf32>
    %61 = vector.extract_strided_slice %57 {offsets = [0, 64], sizes = [8, 64], strides = [1, 1]} : vector<8x192xf32> to vector<8x64xf32>
    %62 = vector.extract_strided_slice %57 {offsets = [0, 128], sizes = [8, 64], strides = [1, 1]} : vector<8x192xf32> to vector<8x64xf32>
    %63 = arith.mulf %61, %25 : vector<8x64xf32>
    %64 = arith.mulf %60, %59 : vector<8x64xf32>
    %65 = arith.addf %63, %64 : vector<8x64xf32>
    %66 = math.tanh %65 : vector<8x64xf32>
    %67 = arith.mulf %62, %66 : vector<8x64xf32>
    %68 = tpu.concatenate %67, %48 in 1 : vector<8x64xf32>, vector<8x64xf32> -> vector<8x128xf32>
    %c0_19 = arith.constant 0 : index
    %c0_20 = arith.constant 0 : index
    %69 = vector.load %arg3[%c0_19, %c0_20] : memref<128x512xf32, #tpu.memory_space<vmem>>, vector<128x512xf32>
    %cst_21 = arith.constant dense<0.000000e+00> : vector<8x512xf32>
    %70 = tpu.matmul %68, %69, %cst_21 {dimension_numbers = #tpu.dot_dimension_numbers<[1], [0], [0], [1], [0, 0, 1, 1], [], []>} : vector<8x128xf32>, vector<128x512xf32>, vector<8x512xf32> -> vector<8x512xf32>
    %71 = vector.extract_strided_slice %70 {offsets = [0, 256], sizes = [8, 256], strides = [1, 1]} : vector<8x512xf32> to vector<8x256xf32>
    %72 = arith.addf %71, %9 : vector<8x256xf32>
    %73 = vector.extract_strided_slice %72 {offsets = [0, 0], sizes = [8, 192], strides = [1, 1]} : vector<8x256xf32> to vector<8x192xf32>
    %74 = arith.negf %73 : vector<8x192xf32>
    %75 = math.exp %74 : vector<8x192xf32>
    %cst_22 = arith.constant 1.000000e+00 : f32
    %76 = vector.broadcast %cst_22 : f32 to vector<8x192xf32>
    %77 = arith.addf %76, %75 : vector<8x192xf32>
    %78 = arith.divf %76, %77 : vector<8x192xf32>
    %79 = vector.extract_strided_slice %72 {offsets = [0, 192], sizes = [8, 64], strides = [1, 1]} : vector<8x256xf32> to vector<8x64xf32>
    %80 = math.tanh %79 : vector<8x64xf32>
    %81 = vector.extract_strided_slice %78 {offsets = [0, 0], sizes = [8, 64], strides = [1, 1]} : vector<8x192xf32> to vector<8x64xf32>
    %82 = vector.extract_strided_slice %78 {offsets = [0, 64], sizes = [8, 64], strides = [1, 1]} : vector<8x192xf32> to vector<8x64xf32>
    %83 = vector.extract_strided_slice %78 {offsets = [0, 128], sizes = [8, 64], strides = [1, 1]} : vector<8x192xf32> to vector<8x64xf32>
    %84 = arith.mulf %82, %46 : vector<8x64xf32>
    %85 = arith.mulf %81, %80 : vector<8x64xf32>
    %86 = arith.addf %84, %85 : vector<8x64xf32>
    %87 = math.tanh %86 : vector<8x64xf32>
    %88 = arith.mulf %83, %87 : vector<8x64xf32>
    %c16 = arith.constant 16 : index
    %c0_23 = arith.constant 0 : index
    %89 = vector.load %arg8[%c16, %c0_23] : memref<64x256xf32, #tpu.memory_space<vmem>>, vector<8x256xf32>
    %90 = vector.extract_strided_slice %70 {offsets = [0, 0], sizes = [8, 256], strides = [1, 1]} : vector<8x512xf32> to vector<8x256xf32>
    %91 = arith.addf %89, %90 : vector<8x256xf32>
    %92 = vector.extract_strided_slice %91 {offsets = [0, 0], sizes = [8, 192], strides = [1, 1]} : vector<8x256xf32> to vector<8x192xf32>
    %93 = arith.negf %92 : vector<8x192xf32>
    %94 = math.exp %93 : vector<8x192xf32>
    %cst_24 = arith.constant 1.000000e+00 : f32
    %95 = vector.broadcast %cst_24 : f32 to vector<8x192xf32>
    %96 = arith.addf %95, %94 : vector<8x192xf32>
    %97 = arith.divf %95, %96 : vector<8x192xf32>
    %98 = vector.extract_strided_slice %91 {offsets = [0, 192], sizes = [8, 64], strides = [1, 1]} : vector<8x256xf32> to vector<8x64xf32>
    %99 = math.tanh %98 : vector<8x64xf32>
    %100 = vector.extract_strided_slice %97 {offsets = [0, 0], sizes = [8, 64], strides = [1, 1]} : vector<8x192xf32> to vector<8x64xf32>
    %101 = vector.extract_strided_slice %97 {offsets = [0, 64], sizes = [8, 64], strides = [1, 1]} : vector<8x192xf32> to vector<8x64xf32>
    %102 = vector.extract_strided_slice %97 {offsets = [0, 128], sizes = [8, 64], strides = [1, 1]} : vector<8x192xf32> to vector<8x64xf32>
    %103 = arith.mulf %101, %65 : vector<8x64xf32>
    %104 = arith.mulf %100, %99 : vector<8x64xf32>
    %105 = arith.addf %103, %104 : vector<8x64xf32>
    %106 = math.tanh %105 : vector<8x64xf32>
    %107 = arith.mulf %102, %106 : vector<8x64xf32>
    %108 = tpu.concatenate %107, %88 in 1 : vector<8x64xf32>, vector<8x64xf32> -> vector<8x128xf32>
    %c0_25 = arith.constant 0 : index
    %c0_26 = arith.constant 0 : index
    %109 = vector.load %arg3[%c0_25, %c0_26] : memref<128x512xf32, #tpu.memory_space<vmem>>, vector<128x512xf32>
    %cst_27 = arith.constant dense<0.000000e+00> : vector<8x512xf32>
    %110 = tpu.matmul %108, %109, %cst_27 {dimension_numbers = #tpu.dot_dimension_numbers<[1], [0], [0], [1], [0, 0, 1, 1], [], []>} : vector<8x128xf32>, vector<128x512xf32>, vector<8x512xf32> -> vector<8x512xf32>
    %111 = vector.extract_strided_slice %110 {offsets = [0, 256], sizes = [8, 256], strides = [1, 1]} : vector<8x512xf32> to vector<8x256xf32>
    %112 = arith.addf %111, %9 : vector<8x256xf32>
    %113 = vector.extract_strided_slice %112 {offsets = [0, 0], sizes = [8, 192], strides = [1, 1]} : vector<8x256xf32> to vector<8x192xf32>
    %114 = arith.negf %113 : vector<8x192xf32>
    %115 = math.exp %114 : vector<8x192xf32>
    %cst_28 = arith.constant 1.000000e+00 : f32
    %116 = vector.broadcast %cst_28 : f32 to vector<8x192xf32>
    %117 = arith.addf %116, %115 : vector<8x192xf32>
    %118 = arith.divf %116, %117 : vector<8x192xf32>
    %119 = vector.extract_strided_slice %112 {offsets = [0, 192], sizes = [8, 64], strides = [1, 1]} : vector<8x256xf32> to vector<8x64xf32>
    %120 = math.tanh %119 : vector<8x64xf32>
    %121 = vector.extract_strided_slice %118 {offsets = [0, 0], sizes = [8, 64], strides = [1, 1]} : vector<8x192xf32> to vector<8x64xf32>
    %122 = vector.extract_strided_slice %118 {offsets = [0, 64], sizes = [8, 64], strides = [1, 1]} : vector<8x192xf32> to vector<8x64xf32>
    %123 = vector.extract_strided_slice %118 {offsets = [0, 128], sizes = [8, 64], strides = [1, 1]} : vector<8x192xf32> to vector<8x64xf32>
    %124 = arith.mulf %122, %86 : vector<8x64xf32>
    %125 = arith.mulf %121, %120 : vector<8x64xf32>
    %126 = arith.addf %124, %125 : vector<8x64xf32>
    %127 = math.tanh %126 : vector<8x64xf32>
    %128 = arith.mulf %123, %127 : vector<8x64xf32>
    %c24 = arith.constant 24 : index
    %c0_29 = arith.constant 0 : index
    %129 = vector.load %arg8[%c24, %c0_29] : memref<64x256xf32, #tpu.memory_space<vmem>>, vector<8x256xf32>
    %130 = vector.extract_strided_slice %110 {offsets = [0, 0], sizes = [8, 256], strides = [1, 1]} : vector<8x512xf32> to vector<8x256xf32>
    %131 = arith.addf %129, %130 : vector<8x256xf32>
    %132 = vector.extract_strided_slice %131 {offsets = [0, 0], sizes = [8, 192], strides = [1, 1]} : vector<8x256xf32> to vector<8x192xf32>
    %133 = arith.negf %132 : vector<8x192xf32>
    %134 = math.exp %133 : vector<8x192xf32>
    %cst_30 = arith.constant 1.000000e+00 : f32
    %135 = vector.broadcast %cst_30 : f32 to vector<8x192xf32>
    %136 = arith.addf %135, %134 : vector<8x192xf32>
    %137 = arith.divf %135, %136 : vector<8x192xf32>
    %138 = vector.extract_strided_slice %131 {offsets = [0, 192], sizes = [8, 64], strides = [1, 1]} : vector<8x256xf32> to vector<8x64xf32>
    %139 = math.tanh %138 : vector<8x64xf32>
    %140 = vector.extract_strided_slice %137 {offsets = [0, 0], sizes = [8, 64], strides = [1, 1]} : vector<8x192xf32> to vector<8x64xf32>
    %141 = vector.extract_strided_slice %137 {offsets = [0, 64], sizes = [8, 64], strides = [1, 1]} : vector<8x192xf32> to vector<8x64xf32>
    %142 = vector.extract_strided_slice %137 {offsets = [0, 128], sizes = [8, 64], strides = [1, 1]} : vector<8x192xf32> to vector<8x64xf32>
    %143 = arith.mulf %141, %105 : vector<8x64xf32>
    %144 = arith.mulf %140, %139 : vector<8x64xf32>
    %145 = arith.addf %143, %144 : vector<8x64xf32>
    %146 = math.tanh %145 : vector<8x64xf32>
    %147 = arith.mulf %142, %146 : vector<8x64xf32>
    %148 = tpu.concatenate %147, %128 in 1 : vector<8x64xf32>, vector<8x64xf32> -> vector<8x128xf32>
    %c0_31 = arith.constant 0 : index
    %c0_32 = arith.constant 0 : index
    %149 = vector.load %arg3[%c0_31, %c0_32] : memref<128x512xf32, #tpu.memory_space<vmem>>, vector<128x512xf32>
    %cst_33 = arith.constant dense<0.000000e+00> : vector<8x512xf32>
    %150 = tpu.matmul %148, %149, %cst_33 {dimension_numbers = #tpu.dot_dimension_numbers<[1], [0], [0], [1], [0, 0, 1, 1], [], []>} : vector<8x128xf32>, vector<128x512xf32>, vector<8x512xf32> -> vector<8x512xf32>
    %151 = vector.extract_strided_slice %150 {offsets = [0, 256], sizes = [8, 256], strides = [1, 1]} : vector<8x512xf32> to vector<8x256xf32>
    %152 = arith.addf %151, %9 : vector<8x256xf32>
    %153 = vector.extract_strided_slice %152 {offsets = [0, 0], sizes = [8, 192], strides = [1, 1]} : vector<8x256xf32> to vector<8x192xf32>
    %154 = arith.negf %153 : vector<8x192xf32>
    %155 = math.exp %154 : vector<8x192xf32>
    %cst_34 = arith.constant 1.000000e+00 : f32
    %156 = vector.broadcast %cst_34 : f32 to vector<8x192xf32>
    %157 = arith.addf %156, %155 : vector<8x192xf32>
    %158 = arith.divf %156, %157 : vector<8x192xf32>
    %159 = vector.extract_strided_slice %152 {offsets = [0, 192], sizes = [8, 64], strides = [1, 1]} : vector<8x256xf32> to vector<8x64xf32>
    %160 = math.tanh %159 : vector<8x64xf32>
    %161 = vector.extract_strided_slice %158 {offsets = [0, 0], sizes = [8, 64], strides = [1, 1]} : vector<8x192xf32> to vector<8x64xf32>
    %162 = vector.extract_strided_slice %158 {offsets = [0, 64], sizes = [8, 64], strides = [1, 1]} : vector<8x192xf32> to vector<8x64xf32>
    %163 = vector.extract_strided_slice %158 {offsets = [0, 128], sizes = [8, 64], strides = [1, 1]} : vector<8x192xf32> to vector<8x64xf32>
    %164 = arith.mulf %162, %126 : vector<8x64xf32>
    %165 = arith.mulf %161, %160 : vector<8x64xf32>
    %166 = arith.addf %164, %165 : vector<8x64xf32>
    %167 = math.tanh %166 : vector<8x64xf32>
    %168 = arith.mulf %163, %167 : vector<8x64xf32>
    %c32 = arith.constant 32 : index
    %c0_35 = arith.constant 0 : index
    %169 = vector.load %arg8[%c32, %c0_35] : memref<64x256xf32, #tpu.memory_space<vmem>>, vector<8x256xf32>
    %170 = vector.extract_strided_slice %150 {offsets = [0, 0], sizes = [8, 256], strides = [1, 1]} : vector<8x512xf32> to vector<8x256xf32>
    %171 = arith.addf %169, %170 : vector<8x256xf32>
    %172 = vector.extract_strided_slice %171 {offsets = [0, 0], sizes = [8, 192], strides = [1, 1]} : vector<8x256xf32> to vector<8x192xf32>
    %173 = arith.negf %172 : vector<8x192xf32>
    %174 = math.exp %173 : vector<8x192xf32>
    %cst_36 = arith.constant 1.000000e+00 : f32
    %175 = vector.broadcast %cst_36 : f32 to vector<8x192xf32>
    %176 = arith.addf %175, %174 : vector<8x192xf32>
    %177 = arith.divf %175, %176 : vector<8x192xf32>
    %178 = vector.extract_strided_slice %171 {offsets = [0, 192], sizes = [8, 64], strides = [1, 1]} : vector<8x256xf32> to vector<8x64xf32>
    %179 = math.tanh %178 : vector<8x64xf32>
    %180 = vector.extract_strided_slice %177 {offsets = [0, 0], sizes = [8, 64], strides = [1, 1]} : vector<8x192xf32> to vector<8x64xf32>
    %181 = vector.extract_strided_slice %177 {offsets = [0, 64], sizes = [8, 64], strides = [1, 1]} : vector<8x192xf32> to vector<8x64xf32>
    %182 = vector.extract_strided_slice %177 {offsets = [0, 128], sizes = [8, 64], strides = [1, 1]} : vector<8x192xf32> to vector<8x64xf32>
    %183 = arith.mulf %181, %145 : vector<8x64xf32>
    %184 = arith.mulf %180, %179 : vector<8x64xf32>
    %185 = arith.addf %183, %184 : vector<8x64xf32>
    %186 = math.tanh %185 : vector<8x64xf32>
    %187 = arith.mulf %182, %186 : vector<8x64xf32>
    %188 = tpu.concatenate %187, %168 in 1 : vector<8x64xf32>, vector<8x64xf32> -> vector<8x128xf32>
    %c0_37 = arith.constant 0 : index
    %c0_38 = arith.constant 0 : index
    %189 = vector.load %arg3[%c0_37, %c0_38] : memref<128x512xf32, #tpu.memory_space<vmem>>, vector<128x512xf32>
    %cst_39 = arith.constant dense<0.000000e+00> : vector<8x512xf32>
    %190 = tpu.matmul %188, %189, %cst_39 {dimension_numbers = #tpu.dot_dimension_numbers<[1], [0], [0], [1], [0, 0, 1, 1], [], []>} : vector<8x128xf32>, vector<128x512xf32>, vector<8x512xf32> -> vector<8x512xf32>
    %191 = vector.extract_strided_slice %190 {offsets = [0, 256], sizes = [8, 256], strides = [1, 1]} : vector<8x512xf32> to vector<8x256xf32>
    %192 = arith.addf %191, %9 : vector<8x256xf32>
    %193 = vector.extract_strided_slice %192 {offsets = [0, 0], sizes = [8, 192], strides = [1, 1]} : vector<8x256xf32> to vector<8x192xf32>
    %194 = arith.negf %193 : vector<8x192xf32>
    %195 = math.exp %194 : vector<8x192xf32>
    %cst_40 = arith.constant 1.000000e+00 : f32
    %196 = vector.broadcast %cst_40 : f32 to vector<8x192xf32>
    %197 = arith.addf %196, %195 : vector<8x192xf32>
    %198 = arith.divf %196, %197 : vector<8x192xf32>
    %199 = vector.extract_strided_slice %192 {offsets = [0, 192], sizes = [8, 64], strides = [1, 1]} : vector<8x256xf32> to vector<8x64xf32>
    %200 = math.tanh %199 : vector<8x64xf32>
    %201 = vector.extract_strided_slice %198 {offsets = [0, 0], sizes = [8, 64], strides = [1, 1]} : vector<8x192xf32> to vector<8x64xf32>
    %202 = vector.extract_strided_slice %198 {offsets = [0, 64], sizes = [8, 64], strides = [1, 1]} : vector<8x192xf32> to vector<8x64xf32>
    %203 = vector.extract_strided_slice %198 {offsets = [0, 128], sizes = [8, 64], strides = [1, 1]} : vector<8x192xf32> to vector<8x64xf32>
    %204 = arith.mulf %202, %166 : vector<8x64xf32>
    %205 = arith.mulf %201, %200 : vector<8x64xf32>
    %206 = arith.addf %204, %205 : vector<8x64xf32>
    %207 = math.tanh %206 : vector<8x64xf32>
    %208 = arith.mulf %203, %207 : vector<8x64xf32>
    %c40 = arith.constant 40 : index
    %c0_41 = arith.constant 0 : index
    %209 = vector.load %arg8[%c40, %c0_41] : memref<64x256xf32, #tpu.memory_space<vmem>>, vector<8x256xf32>
    %210 = vector.extract_strided_slice %190 {offsets = [0, 0], sizes = [8, 256], strides = [1, 1]} : vector<8x512xf32> to vector<8x256xf32>
    %211 = arith.addf %209, %210 : vector<8x256xf32>
    %212 = vector.extract_strided_slice %211 {offsets = [0, 0], sizes = [8, 192], strides = [1, 1]} : vector<8x256xf32> to vector<8x192xf32>
    %213 = arith.negf %212 : vector<8x192xf32>
    %214 = math.exp %213 : vector<8x192xf32>
    %cst_42 = arith.constant 1.000000e+00 : f32
    %215 = vector.broadcast %cst_42 : f32 to vector<8x192xf32>
    %216 = arith.addf %215, %214 : vector<8x192xf32>
    %217 = arith.divf %215, %216 : vector<8x192xf32>
    %218 = vector.extract_strided_slice %211 {offsets = [0, 192], sizes = [8, 64], strides = [1, 1]} : vector<8x256xf32> to vector<8x64xf32>
    %219 = math.tanh %218 : vector<8x64xf32>
    %220 = vector.extract_strided_slice %217 {offsets = [0, 0], sizes = [8, 64], strides = [1, 1]} : vector<8x192xf32> to vector<8x64xf32>
    %221 = vector.extract_strided_slice %217 {offsets = [0, 64], sizes = [8, 64], strides = [1, 1]} : vector<8x192xf32> to vector<8x64xf32>
    %222 = vector.extract_strided_slice %217 {offsets = [0, 128], sizes = [8, 64], strides = [1, 1]} : vector<8x192xf32> to vector<8x64xf32>
    %223 = arith.mulf %221, %185 : vector<8x64xf32>
    %224 = arith.mulf %220, %219 : vector<8x64xf32>
    %225 = arith.addf %223, %224 : vector<8x64xf32>
    %226 = math.tanh %225 : vector<8x64xf32>
    %227 = arith.mulf %222, %226 : vector<8x64xf32>
    %228 = tpu.concatenate %227, %208 in 1 : vector<8x64xf32>, vector<8x64xf32> -> vector<8x128xf32>
    %c0_43 = arith.constant 0 : index
    %c0_44 = arith.constant 0 : index
    %229 = vector.load %arg3[%c0_43, %c0_44] : memref<128x512xf32, #tpu.memory_space<vmem>>, vector<128x512xf32>
    %cst_45 = arith.constant dense<0.000000e+00> : vector<8x512xf32>
    %230 = tpu.matmul %228, %229, %cst_45 {dimension_numbers = #tpu.dot_dimension_numbers<[1], [0], [0], [1], [0, 0, 1, 1], [], []>} : vector<8x128xf32>, vector<128x512xf32>, vector<8x512xf32> -> vector<8x512xf32>
    %231 = vector.extract_strided_slice %230 {offsets = [0, 256], sizes = [8, 256], strides = [1, 1]} : vector<8x512xf32> to vector<8x256xf32>
    %232 = arith.addf %231, %9 : vector<8x256xf32>
    %233 = vector.extract_strided_slice %232 {offsets = [0, 0], sizes = [8, 192], strides = [1, 1]} : vector<8x256xf32> to vector<8x192xf32>
    %234 = arith.negf %233 : vector<8x192xf32>
    %235 = math.exp %234 : vector<8x192xf32>
    %cst_46 = arith.constant 1.000000e+00 : f32
    %236 = vector.broadcast %cst_46 : f32 to vector<8x192xf32>
    %237 = arith.addf %236, %235 : vector<8x192xf32>
    %238 = arith.divf %236, %237 : vector<8x192xf32>
    %239 = vector.extract_strided_slice %232 {offsets = [0, 192], sizes = [8, 64], strides = [1, 1]} : vector<8x256xf32> to vector<8x64xf32>
    %240 = math.tanh %239 : vector<8x64xf32>
    %241 = vector.extract_strided_slice %238 {offsets = [0, 0], sizes = [8, 64], strides = [1, 1]} : vector<8x192xf32> to vector<8x64xf32>
    %242 = vector.extract_strided_slice %238 {offsets = [0, 64], sizes = [8, 64], strides = [1, 1]} : vector<8x192xf32> to vector<8x64xf32>
    %243 = vector.extract_strided_slice %238 {offsets = [0, 128], sizes = [8, 64], strides = [1, 1]} : vector<8x192xf32> to vector<8x64xf32>
    %244 = arith.mulf %242, %206 : vector<8x64xf32>
    %245 = arith.mulf %241, %240 : vector<8x64xf32>
    %246 = arith.addf %244, %245 : vector<8x64xf32>
    %247 = math.tanh %246 : vector<8x64xf32>
    %248 = arith.mulf %243, %247 : vector<8x64xf32>
    %c48 = arith.constant 48 : index
    %c0_47 = arith.constant 0 : index
    %249 = vector.load %arg8[%c48, %c0_47] : memref<64x256xf32, #tpu.memory_space<vmem>>, vector<8x256xf32>
    %250 = vector.extract_strided_slice %230 {offsets = [0, 0], sizes = [8, 256], strides = [1, 1]} : vector<8x512xf32> to vector<8x256xf32>
    %251 = arith.addf %249, %250 : vector<8x256xf32>
    %252 = vector.extract_strided_slice %251 {offsets = [0, 0], sizes = [8, 192], strides = [1, 1]} : vector<8x256xf32> to vector<8x192xf32>
    %253 = arith.negf %252 : vector<8x192xf32>
    %254 = math.exp %253 : vector<8x192xf32>
    %cst_48 = arith.constant 1.000000e+00 : f32
    %255 = vector.broadcast %cst_48 : f32 to vector<8x192xf32>
    %256 = arith.addf %255, %254 : vector<8x192xf32>
    %257 = arith.divf %255, %256 : vector<8x192xf32>
    %258 = vector.extract_strided_slice %251 {offsets = [0, 192], sizes = [8, 64], strides = [1, 1]} : vector<8x256xf32> to vector<8x64xf32>
    %259 = math.tanh %258 : vector<8x64xf32>
    %260 = vector.extract_strided_slice %257 {offsets = [0, 0], sizes = [8, 64], strides = [1, 1]} : vector<8x192xf32> to vector<8x64xf32>
    %261 = vector.extract_strided_slice %257 {offsets = [0, 64], sizes = [8, 64], strides = [1, 1]} : vector<8x192xf32> to vector<8x64xf32>
    %262 = vector.extract_strided_slice %257 {offsets = [0, 128], sizes = [8, 64], strides = [1, 1]} : vector<8x192xf32> to vector<8x64xf32>
    %263 = arith.mulf %261, %225 : vector<8x64xf32>
    %264 = arith.mulf %260, %259 : vector<8x64xf32>
    %265 = arith.addf %263, %264 : vector<8x64xf32>
    %266 = math.tanh %265 : vector<8x64xf32>
    %267 = arith.mulf %262, %266 : vector<8x64xf32>
    %268 = tpu.concatenate %267, %248 in 1 : vector<8x64xf32>, vector<8x64xf32> -> vector<8x128xf32>
    %c0_49 = arith.constant 0 : index
    %c0_50 = arith.constant 0 : index
    %269 = vector.load %arg3[%c0_49, %c0_50] : memref<128x512xf32, #tpu.memory_space<vmem>>, vector<128x512xf32>
    %cst_51 = arith.constant dense<0.000000e+00> : vector<8x512xf32>
    %270 = tpu.matmul %268, %269, %cst_51 {dimension_numbers = #tpu.dot_dimension_numbers<[1], [0], [0], [1], [0, 0, 1, 1], [], []>} : vector<8x128xf32>, vector<128x512xf32>, vector<8x512xf32> -> vector<8x512xf32>
    %271 = vector.extract_strided_slice %270 {offsets = [0, 256], sizes = [8, 256], strides = [1, 1]} : vector<8x512xf32> to vector<8x256xf32>
    %272 = arith.addf %271, %9 : vector<8x256xf32>
    %273 = vector.extract_strided_slice %272 {offsets = [0, 0], sizes = [8, 192], strides = [1, 1]} : vector<8x256xf32> to vector<8x192xf32>
    %274 = arith.negf %273 : vector<8x192xf32>
    %275 = math.exp %274 : vector<8x192xf32>
    %cst_52 = arith.constant 1.000000e+00 : f32
    %276 = vector.broadcast %cst_52 : f32 to vector<8x192xf32>
    %277 = arith.addf %276, %275 : vector<8x192xf32>
    %278 = arith.divf %276, %277 : vector<8x192xf32>
    %279 = vector.extract_strided_slice %272 {offsets = [0, 192], sizes = [8, 64], strides = [1, 1]} : vector<8x256xf32> to vector<8x64xf32>
    %280 = math.tanh %279 : vector<8x64xf32>
    %281 = vector.extract_strided_slice %278 {offsets = [0, 0], sizes = [8, 64], strides = [1, 1]} : vector<8x192xf32> to vector<8x64xf32>
    %282 = vector.extract_strided_slice %278 {offsets = [0, 64], sizes = [8, 64], strides = [1, 1]} : vector<8x192xf32> to vector<8x64xf32>
    %283 = vector.extract_strided_slice %278 {offsets = [0, 128], sizes = [8, 64], strides = [1, 1]} : vector<8x192xf32> to vector<8x64xf32>
    %284 = arith.mulf %282, %246 : vector<8x64xf32>
    %285 = arith.mulf %281, %280 : vector<8x64xf32>
    %286 = arith.addf %284, %285 : vector<8x64xf32>
    %287 = math.tanh %286 : vector<8x64xf32>
    %288 = arith.mulf %283, %287 : vector<8x64xf32>
    %c56 = arith.constant 56 : index
    %c0_53 = arith.constant 0 : index
    %289 = vector.load %arg8[%c56, %c0_53] : memref<64x256xf32, #tpu.memory_space<vmem>>, vector<8x256xf32>
    %290 = vector.extract_strided_slice %270 {offsets = [0, 0], sizes = [8, 256], strides = [1, 1]} : vector<8x512xf32> to vector<8x256xf32>
    %291 = arith.addf %289, %290 : vector<8x256xf32>
    %292 = vector.extract_strided_slice %291 {offsets = [0, 0], sizes = [8, 192], strides = [1, 1]} : vector<8x256xf32> to vector<8x192xf32>
    %293 = arith.negf %292 : vector<8x192xf32>
    %294 = math.exp %293 : vector<8x192xf32>
    %cst_54 = arith.constant 1.000000e+00 : f32
    %295 = vector.broadcast %cst_54 : f32 to vector<8x192xf32>
    %296 = arith.addf %295, %294 : vector<8x192xf32>
    %297 = arith.divf %295, %296 : vector<8x192xf32>
    %298 = vector.extract_strided_slice %291 {offsets = [0, 192], sizes = [8, 64], strides = [1, 1]} : vector<8x256xf32> to vector<8x64xf32>
    %299 = math.tanh %298 : vector<8x64xf32>
    %300 = vector.extract_strided_slice %297 {offsets = [0, 0], sizes = [8, 64], strides = [1, 1]} : vector<8x192xf32> to vector<8x64xf32>
    %301 = vector.extract_strided_slice %297 {offsets = [0, 64], sizes = [8, 64], strides = [1, 1]} : vector<8x192xf32> to vector<8x64xf32>
    %302 = vector.extract_strided_slice %297 {offsets = [0, 128], sizes = [8, 64], strides = [1, 1]} : vector<8x192xf32> to vector<8x64xf32>
    %303 = arith.mulf %301, %265 : vector<8x64xf32>
    %304 = arith.mulf %300, %299 : vector<8x64xf32>
    %305 = arith.addf %303, %304 : vector<8x64xf32>
    %306 = math.tanh %305 : vector<8x64xf32>
    %307 = arith.mulf %302, %306 : vector<8x64xf32>
    %308 = tpu.concatenate %307, %288 in 1 : vector<8x64xf32>, vector<8x64xf32> -> vector<8x128xf32>
    %c0_55 = arith.constant 0 : index
    %c0_56 = arith.constant 0 : index
    %309 = vector.load %arg3[%c0_55, %c0_56] : memref<128x512xf32, #tpu.memory_space<vmem>>, vector<128x512xf32>
    %cst_57 = arith.constant dense<0.000000e+00> : vector<8x512xf32>
    %310 = tpu.matmul %308, %309, %cst_57 {dimension_numbers = #tpu.dot_dimension_numbers<[1], [0], [0], [1], [0, 0, 1, 1], [], []>} : vector<8x128xf32>, vector<128x512xf32>, vector<8x512xf32> -> vector<8x512xf32>
    %311 = vector.extract_strided_slice %310 {offsets = [0, 256], sizes = [8, 256], strides = [1, 1]} : vector<8x512xf32> to vector<8x256xf32>
    %312 = arith.addf %311, %9 : vector<8x256xf32>
    %313 = vector.extract_strided_slice %312 {offsets = [0, 0], sizes = [8, 192], strides = [1, 1]} : vector<8x256xf32> to vector<8x192xf32>
    %314 = arith.negf %313 : vector<8x192xf32>
    %315 = math.exp %314 : vector<8x192xf32>
    %cst_58 = arith.constant 1.000000e+00 : f32
    %316 = vector.broadcast %cst_58 : f32 to vector<8x192xf32>
    %317 = arith.addf %316, %315 : vector<8x192xf32>
    %318 = arith.divf %316, %317 : vector<8x192xf32>
    %319 = vector.extract_strided_slice %312 {offsets = [0, 192], sizes = [8, 64], strides = [1, 1]} : vector<8x256xf32> to vector<8x64xf32>
    %320 = math.tanh %319 : vector<8x64xf32>
    %321 = vector.extract_strided_slice %318 {offsets = [0, 0], sizes = [8, 64], strides = [1, 1]} : vector<8x192xf32> to vector<8x64xf32>
    %322 = vector.extract_strided_slice %318 {offsets = [0, 64], sizes = [8, 64], strides = [1, 1]} : vector<8x192xf32> to vector<8x64xf32>
    %323 = vector.extract_strided_slice %318 {offsets = [0, 128], sizes = [8, 64], strides = [1, 1]} : vector<8x192xf32> to vector<8x64xf32>
    %324 = arith.mulf %322, %286 : vector<8x64xf32>
    %325 = arith.mulf %321, %320 : vector<8x64xf32>
    %326 = arith.addf %324, %325 : vector<8x64xf32>
    %327 = math.tanh %326 : vector<8x64xf32>
    %328 = arith.mulf %323, %327 : vector<8x64xf32>
    %c0_59 = arith.constant 0 : index
    %c0_60 = arith.constant 0 : index
    %329 = vector.load %arg5[%c0_59, %c0_60] : memref<1x64xf32, #tpu.memory_space<vmem>>, vector<1x64xf32>
    %330 = vector.shape_cast %329 : vector<1x64xf32> to vector<1x64xf32>
    %331 = vector.broadcast %330 : vector<1x64xf32> to vector<8x64xf32>
    %332 = arith.mulf %328, %331 : vector<8x64xf32>
    %cst_61 = arith.constant dense<0.000000e+00> : vector<8xf32>
    %333 = vector.multi_reduction <add>, %332, %cst_61 [1] : vector<8x64xf32> to vector<8xf32>
    %334 = vector.shape_cast %333 : vector<8xf32> to vector<8x1xf32>
    %c0_62 = arith.constant 0 : index
    %c0_63 = arith.constant 0 : index
    %335 = vector.load %arg6[%c0_62, %c0_63] : memref<1x1xf32, #tpu.memory_space<vmem>>, vector<1x1xf32>
    %336 = vector.broadcast %335 : vector<1x1xf32> to vector<8x1xf32>
    %337 = arith.addf %334, %336 : vector<8x1xf32>
    %c0_64 = arith.constant 0 : index
    %c0_65 = arith.constant 0 : index
    %338 = vector.load %arg7[%c0_64, %c0_65] : memref<8x1xf32, #tpu.memory_space<vmem>>, vector<8x1xf32>
    tpu.vector_store %arg7[%c0_64, %c0_65], %337 {strides = array<i32>} : memref<8x1xf32, #tpu.memory_space<vmem>>, vector<8x1xf32>,
    return
  }
}

</mosaic_0001>

<bundles_post_ra>
// kernel: hft_lstm_forward.1
= control target key start
LH: loop header
LB: loop body
LE: loop exit
PB: predicated region body
PF: predicated region fallthrough
CT: control target
= control target key end

     0   :  { %s3335_s0 = inlined_call_operand.vmem [shape: f32[64,8], index: 0, kind: input, shape index: {}]   ;;  %s3336_s1 = inlined_call_operand.vmem [shape: f32[8,256], index: 1, kind: input, shape index: {}]   ;;  %s3337_s2 = inlined_call_operand.vmem [shape: f32[1,256], index: 2, kind: input, shape index: {}]   ;;  %s3338_s3 = inlined_call_operand.hbm [shape: f32[128,512], index: 3, kind: input, shape index: {}]   ;;  %s3339_s4 = inlined_call_operand.vmem [shape: f32[1,256], index: 4, kind: input, shape index: {}]   ;;  %s3340_s5 = inlined_call_operand.vmem [shape: f32[1,64], index: 5, kind: input, shape index: {}]   ;;  %s3341_s6 = inlined_call_operand.<no memory space> [shape: f32[1,1], index: 6, kind: input, shape index: {}]   ;;  %s3342_s7 = inlined_call_operand.vmem [shape: f32[8,1], index: 7, kind: output, shape index: {}]  }
   0x1   :  { %v12_v0 = vstv %s3341_s6 }
   0x2   :  { %13 = vst [vmem:[#allocation3] sm:$0x1] %v12_v0 }
   0x3   :  { %14 = vsyncpa [#allocation5], 0  ;;  %s2721_s26 = smov [#allocation4]   ;;  %s2697_s30 = scalar_lea.hbm %s3338_s3, 8192 }
   0x4   :  { %s26_s27 = sshll.u32 %s2721_s26, 4  ;;  %p2698_p0 = scmp.ne.s32.totalorder %s3338_s3, %s2697_s30  ;;  %s27_s27 = int_to_ptr.vmem [resolvable:$true] %s26_s27 }
   0x5   :  { %p2701_p1 = scmp.lt.u32.totalorder %s2697_s30, %s3338_s3 }
   0x7   :  { %p2703_p2 = pnand %p2701_p1, %p2698_p0 }
   0x9   :  { %2706 = shalt.err (!%p2703_p2)
}
   0xa   :  { %s2707_s6 = scalar_lea.vmem %s27_s27, 8192  ;;  %p2712_p4 = scmp.lt.s32.totalorder %s27_s27, %s27_s27 }
   0xb   :  { %p2708_p3 = scmp.ne.s32.totalorder %s27_s27, %s2707_s6  ;;  %p2713_p5 = scmp.lt.s32.totalorder %s2707_s6, %s2707_s6 }
   0xd   :  { %p2714_p6 = por %p2713_p5, %p2712_p4 }
   0xf   :  { %p2715_p7 = pnand %p2714_p6, %p2708_p3 }
  0x11   :  { %2718 = shalt.err (!%p2715_p7)
}
  0x12   :  { %s2722_s12 = smov 512   ;;  %s2723_s13 = smov 32  }
  0x13   :  { %32 = dma.hbm_to_vmem [thread:$0]  %s3338_s3, 8192, %s27_s27, [#allocation5], %s2722_s12, %s2722_s12, %s2723_s13  }
  0x14   :  { %2719 = dma.done.wait [#allocation5], 8192  }
  0x15   :  { %2720 = vsyncadd [#allocation5], 4294959104  ;;  %v2724_v1 = vmov 0.0   ;;  %v51_v2 = vld [vmem:[%s3336_s1 + $0x8] sm:$0xff]  ;;  %v50_v3 = vld [vmem:[%s3336_s1] sm:$0xff]  ;;  %vm64_vm0 = vcmask 64512   ;;  %v54_v5 = vlaneseq }
  0x16   :  { %153 = vmatprep.mubr.f32.mxu0 %v2724_v1  ;;  %463 = vmatprep.mubr.f32.mxu1 %v2724_v1  ;;  %v42_v4 = vld [vmem:[%s3335_s0] sm:$0xff]  ;;  %s2725_s1 = smov 64   ;;  %v265_v23 = vld [vmem:[#allocation4 + $0x8] sm:$0xff]  ;;  %v266_v32 = vld [vmem:[#allocation4 + $0x10] sm:$0xff]  ;;  %vm262_vm1 = vcmask 523264   ;;  %vm1941_vm2 = vcmask 7168  }
  0x17   :  { %89 = vmatprep.subr.mxu0 %v51_v2  ;;  %v2794_v6 = vshrl.u32 %v54_v5, 7  ;;  %v52_v8 = vld [vmem:[%s3337_s2] sm:$0x3]  ;;  %v269_v24 = vld [vmem:[#allocation4 + $0x28] sm:$0xff]  ;;  %v270_v33 = vld [vmem:[#allocation4 + $0x30] sm:$0xff] }
  0x18   :  { %90 = vmatpush1.msra.mxu0 %v50_v3  ;;  %v267_v25 = vld [vmem:[#allocation4 + $0x18] sm:$0xff]  ;;  %v2819_v26 = vpack.c.bf16 %v269_v24, %v265_v23  ;;  %v264_v28 = vld [vmem:[#allocation4] sm:$0xff]  ;;  %v2829_v35 = vpack.c.bf16 %v270_v33, %v266_v32  ;;  %v273_v36 = vld [vmem:[#allocation4 + $0x48] sm:$0xff] }
  0x19   :  { %1948 = vmatmul.mubr.msk.f32.vlgmr.msra.gmra.mrb[0].mxu0 %vm64_vm0, %v42_v4  ;;  %v60_v7 = vsub.s32 1, %v2794_v6  ;;  %v56_v14 = vsub.s32 0, %v2794_v6  ;;  %v271_v27 = vld [vmem:[#allocation4 + $0x38] sm:$0xff]  ;;  %v268_v29 = vld [vmem:[#allocation4 + $0x20] sm:$0xff]  ;;  %v277_v37 = vld [vmem:[#allocation4 + $0x68] sm:$0xff] }
  0x1a   :  { %159 = vmatprep.mubr.f32.mxu0 %v2724_v1  ;;  %v2821_v30 = vpack.c.bf16 %v271_v27, %v267_v25  ;;  %v2823_v31 = vpack.c.bf16 %v268_v29, %v264_v28  ;;  %v43_v34 = vld [vmem:[%s3335_s0 + $0x8] sm:$0xff]  ;;  %1993 = vmatprep.subr.bf16.mxu0 %v2819_v26  ;;  %v275_v38 = vld [vmem:[#allocation4 + $0x58] sm:$0xff]  ;;  %v2834_v39 = vpack.c.bf16 %v277_v37, %v273_v36  ;;  %v274_v45 = vld [vmem:[#allocation4 + $0x50] sm:$0xff] }
  0x1b   :  { %v2802_v9 = vrot.slane %v52_v8, %v60_v7  ;;  %v2812_v15 = vrot.slane %v52_v8, %v56_v14  ;;  %v279_v40 = vld [vmem:[#allocation4 + $0x78] sm:$0xff]  ;;  %v272_v41 = vld [vmem:[#allocation4 + $0x40] sm:$0xff]  ;;  %v278_v46 = vld [vmem:[#allocation4 + $0x70] sm:$0xff] }
  0x1c   :  { %2025 = vmatprep.subr.bf16.mxu1 %v2821_v30  ;;  %1995 = vmatpush1.bf16.msra.mxu0 %v2823_v31  ;;  %v276_v42 = vld [vmem:[#allocation4 + $0x60] sm:$0xff]  ;;  %v2837_v43 = vpack.c.bf16 %v279_v40, %v275_v38  ;;  %v44_v47 = vld [vmem:[%s3335_s0 + $0x10] sm:$0xff]  ;;  %v2846_v48 = vpack.c.bf16 %v278_v46, %v274_v45  ;;  %v283_v51 = vld [vmem:[#allocation4 + $0x98] sm:$0xff] }
  0x1d   :  { %1949 = vmatmul.mubr.msk.f32.gmra.mrb[2].mxu0 %vm64_vm0, %v43_v34  ;;  %2027 = vmatpush1.bf16.msra.mxu1 %v2829_v35  ;;  %v2839_v44 = vpack.c.bf16 %v276_v42, %v272_v41  ;;  %v281_v49 = vld [vmem:[#allocation4 + $0x88] sm:$0xff]  ;;  %v287_v53 = vld [vmem:[#allocation4 + $0xb8] sm:$0xff]  ;;  %v280_v54 = vld [vmem:[#allocation4 + $0x80] sm:$0xff] }
  0x1e   :  { %165 = vmatprep.mubr.f32.mxu0 %v2724_v1  ;;  %1997 = vmatprep.subr.bf16.mxu0 %v2834_v39  ;;  %v285_v50 = vld [vmem:[#allocation4 + $0xa8] sm:$0xff]  ;;  %v284_v55 = vld [vmem:[#allocation4 + $0xa0] sm:$0xff]  ;;  %v2853_v56 = vpack.c.bf16 %v287_v53, %v283_v51  ;;  %v282_v58 = vld [vmem:[#allocation4 + $0x90] sm:$0xff] }
  0x1f   :  { %2029 = vmatprep.subr.bf16.mxu1 %v2837_v43  ;;  %v2850_v52 = vpack.c.bf16 %v285_v50, %v281_v49  ;;  %v2855_v57 = vpack.c.bf16 %v284_v55, %v280_v54  ;;  %v286_v59 = vld [vmem:[#allocation4 + $0xb0] sm:$0xff]  ;;  %v289_v62 = vld [vmem:[#allocation4 + $0xc8] sm:$0xff]  ;;  %v291_v0 = vld [vmem:[#allocation4 + $0xd8] sm:$0xff] }
  0x20   :  { %1999 = vmatpush1.bf16.msra.mxu0 %v2839_v44  ;;  %v45_v60 = vld [vmem:[%s3335_s0 + $0x18] sm:$0xff]  ;;  %v2863_v61 = vpack.c.bf16 %v286_v59, %v282_v58  ;;  %v293_v63 = vld [vmem:[#allocation4 + $0xe8] sm:$0xff]  ;;  %v288_v4 = vld [vmem:[#allocation4 + $0xc0] sm:$0xff] }
  0x21   :  { %1950 = vmatmul.mubr.msk.f32.gmra.mrb[4].mxu0 %vm64_vm0, %v44_v47  ;;  %2031 = vmatpush1.bf16.msra.mxu1 %v2846_v48  ;;  %v2866_v2 = vpack.c.bf16 %v293_v63, %v289_v62  ;;  %v295_v3 = vld [vmem:[#allocation4 + $0xf8] sm:$0xff]  ;;  %v292_v5 = vld [vmem:[#allocation4 + $0xe0] sm:$0xff]  ;;  %v298_v28 = vld [vmem:[#allocation4 + $0x110] sm:$0xff] }
  0x22   :  { %171 = vmatprep.mubr.f32.mxu0 %v2724_v1  ;;  %2001 = vmatprep.subr.bf16.mxu0 %v2850_v52  ;;  %v2869_v8 = vpack.c.bf16 %v295_v3, %v291_v0  ;;  %v303_v23 = vld [vmem:[#allocation4 + $0x138] sm:$0xff]  ;;  %v296_v24 = vld [vmem:[#allocation4 + $0x100] sm:$0xff]  ;;  %v302_v29 = vld [vmem:[#allocation4 + $0x130] sm:$0xff] }
  0x23   :  { %2033 = vmatprep.subr.bf16.mxu1 %v2853_v56  ;;  %v300_v25 = vld [vmem:[#allocation4 + $0x120] sm:$0xff]  ;;  %v305_v32 = vld [vmem:[#allocation4 + $0x148] sm:$0xff]  ;;  %v307_v34 = vld [vmem:[#allocation4 + $0x158] sm:$0xff]  ;;  %v2897_v40 = vpack.c.bf16 %v302_v29, %v298_v28 }
  0x24   :  { %2003 = vmatpush1.bf16.msra.mxu0 %v2855_v57  ;;  %v309_v33 = vld [vmem:[#allocation4 + $0x168] sm:$0xff]  ;;  %v2889_v36 = vpack.c.bf16 %v300_v25, %v296_v24  ;;  %v311_v38 = vld [vmem:[#allocation4 + $0x178] sm:$0xff]  ;;  %v304_v42 = vld [vmem:[#allocation4 + $0x140] sm:$0xff] }
  0x25   :  { %1951 = vmatmul.mubr.msk.f32.gmra.mrb[6].mxu0 %vm64_vm0, %v45_v60  ;;  %2035 = vmatpush1.bf16.msra.mxu1 %v2863_v61  ;;  %v47_v37 = vld [vmem:[%s3335_s0 + $0x28] sm:$0xff]  ;;  %v2899_v41 = vpack.c.bf16 %v309_v33, %v305_v32  ;;  %v306_v46 = vld [vmem:[#allocation4 + $0x150] sm:$0xff]  ;;  %v2902_v47 = vpack.c.bf16 %v311_v38, %v307_v34  ;;  %v315_v53 = vld [vmem:[#allocation4 + $0x198] sm:$0xff] }
  0x26   :  { %177 = vmatprep.mubr.f32.mxu0 %v2724_v1  ;;  %2005 = vmatprep.subr.bf16.mxu0 %v2866_v2  ;;  %v308_v45 = vld [vmem:[#allocation4 + $0x160] sm:$0xff]  ;;  %v310_v49 = vld [vmem:[#allocation4 + $0x170] sm:$0xff]  ;;  %v313_v50 = vld [vmem:[#allocation4 + $0x188] sm:$0xff] }
  0x27   :  { %2037 = vmatprep.subr.bf16.mxu1 %v2869_v8  ;;  %v317_v51 = vld [vmem:[#allocation4 + $0x1a8] sm:$0xff]  ;;  %v319_v54 = vld [vmem:[#allocation4 + $0x1b8] sm:$0xff]  ;;  %v2906_v55 = vpack.c.bf16 %v308_v45, %v304_v42  ;;  %v2914_v59 = vpack.c.bf16 %v310_v49, %v306_v46  ;;  %v312_v62 = vld [vmem:[#allocation4 + $0x180] sm:$0xff] }
  0x28   :  { %v48_v58 = vld [vmem:[%s3335_s0 + $0x30] sm:$0xff]  ;;  %v2916_v60 = vpack.c.bf16 %v317_v51, %v313_v50  ;;  %v316_v63 = vld [vmem:[#allocation4 + $0x1a0] sm:$0xff]  ;;  %v2919_v3 = vpack.c.bf16 %v319_v54, %v315_v53 }
  0x29   :  { %v314_v0 = vld [vmem:[#allocation4 + $0x190] sm:$0xff]  ;;  %v320_v24 = vld [vmem:[#allocation4 + $0x1c0] sm:$0xff] }
  0x2a   :  { %v324_v25 = vld [vmem:[#allocation4 + $0x1e0] sm:$0xff]  ;;  %v322_v29 = vld [vmem:[#allocation4 + $0x1d0] sm:$0xff] }
  0x2b   :  { %v326_v32 = vld [vmem:[#allocation4 + $0x1f0] sm:$0xff]  ;;  %v2940_v33 = vpack.c.bf16 %v324_v25, %v320_v24 }
  0x2c   :  { %v2945_v34 = vpack.c.bf16 %v326_v32, %v322_v29 }
  0xec   :  { %v155_v10 = vpop.f32.mrb[0].mxu0 }
  0xed   :  { %v157_v11 = vpop.f32.mrb[1].mxu0  ;;  %v156_v16 = vadd.f32 %v155_v10, %v2812_v15  ;;  %v290_v10 = vld [vmem:[#allocation4 + $0xd0] sm:$0xff] }
  0xee   :  { %v2805_v12 = vadd.f32 %v157_v11, %v2802_v9  ;;  %v294_v11 = vld [vmem:[#allocation4 + $0xf0] sm:$0xff] }
  0xef   :  { %v1956_v17 = vmul.f32 -1.442695, %v156_v16  ;;  %v2875_v16 = vpack.c.bf16 %v292_v5, %v288_v4  ;;  %v318_v4 = vld [vmem:[#allocation4 + $0x1b0] sm:$0xff]  ;;  %v321_v5 = vld [vmem:[#allocation4 + $0x1c8] sm:$0xff] }
  0xf0   :  { %2505 = vtanh.f32 %v2805_v12  ;;  %v1957_v46 = vmul.f32 -1.442695, %v2805_v12  ;;  %v218_v12 = vld [vmem:[%s3339_s4] sm:$0x3] }
  0xf1   :  { %2507 = vpow2.f32 %v1956_v17  ;;  %v297_v17 = vld [vmem:[#allocation4 + $0x108] sm:$0xff]  ;;  %2007 = vmatpush1.bf16.msra.mxu0 %v2875_v16 }
  0xfa   :  { %v2506_v13 = vpop.eup %2505 }
  0xfb   :  { %247 = vrot.lane.b32.xlu0 %v2506_v13, %s2725_s1  ;;  %v2508_v18 = vpop.eup %2507  ;;  %v46_v13 = vld [vmem:[%s3335_s0 + $0x20] sm:$0xff] }
  0xfc   :  { %v238_v19 = vadd.f32 1.0, %v2508_v18  ;;  %v301_v18 = vld [vmem:[#allocation4 + $0x128] sm:$0xff]  ;;  %1952 = vmatmul.mubr.msk.f32.gmra.mrb[8].mxu0 %vm64_vm0, %v46_v13  ;;  %v327_v13 = vld [vmem:[#allocation4 + $0x1f8] sm:$0xff] }
  0xfd   :  { %183 = vmatprep.mubr.f32.mxu0 %v2724_v1 }
  0xfe   :  { %2509 = vrcp.f32 %v238_v19  ;;  %v299_v19 = vld [vmem:[#allocation4 + $0x118] sm:$0xff] }
  0xff   :  { %v2885_v27 = vpack.c.bf16 %v303_v23, %v299_v19  ;;  %v2931_v19 = vpack.c.bf16 %v318_v4, %v314_v0 }
 0x100   :  { %1953 = vmatmul.mubr.msk.f32.gmra.mrb[10].mxu0 %vm64_vm0, %v47_v37 }
 0x101   :  { %189 = vmatprep.mubr.f32.mxu0 %v2724_v1 }
 0x104   :  { %1954 = vmatmul.mubr.msk.f32.gmra.mrb[12].mxu0 %vm64_vm0, %v48_v58 }
 0x105   :  { %195 = vmatprep.mubr.f32.mxu0 %v2724_v1 }
 0x108   :  { %v2815_v20 = vpop.eup %2509 }
 0x109   :  { %v245_v37 = vmul.f32 0.0, %v2815_v20 }
 0x16d   :  { %v248_v21 = vpop.permute.xlu0 %247 }
 0x16e   :  { %v250_v22 = vmul.f32 %v2815_v20, %v248_v21  ;;  %v2880_v21 = vpack.c.bf16 %v294_v11, %v290_v10  ;;  %v325_v10 = vld [vmem:[#allocation4 + $0x1e8] sm:$0xff]  ;;  %v323_v11 = vld [vmem:[#allocation4 + $0x1d8] sm:$0xff] }
 0x16f   :  { %v2933_v23 = vpack.c.bf16 %v325_v10, %v321_v5  ;;  %v2936_v28 = vpack.c.bf16 %v327_v13, %v323_v11 }
 0x170   :  { %252 = vrot.lane.b32.xlu0 %v250_v22, %s2725_s1  ;;  %v2882_v22 = vpack.c.bf16 %v301_v18, %v297_v17  ;;  %2039 = vmatpush1.bf16.msra.mxu1 %v2880_v21  ;;  %v2923_v17 = vpack.c.bf16 %v316_v63, %v312_v62  ;;  %v49_v18 = vld [vmem:[%s3335_s0 + $0x38] sm:$0xff]  ;;  %v2999_v63 = vrot.slane %v218_v12, %v60_v7 }
 0x171   :  { %2041 = vmatprep.subr.bf16.mxu1 %v2885_v27  ;;  %1955 = vmatmul.mubr.msk.f32.gmra.mrb[14].mxu0 %vm64_vm0, %v49_v18  ;;  %v3008_v18 = vrot.slane %v218_v12, %v56_v14 }
 0x172   :  { %2009 = vmatprep.subr.bf16.mxu0 %v2882_v22  ;;  %392 = vmatprep.mubr.f32.mxu0 %v2724_v1 }
 0x173   :  { %2011 = vmatpush1.bf16.msra.mxu0 %v2889_v36 }
 0x174   :  { %2043 = vmatpush1.bf16.msra.mxu1 %v2897_v40  ;;  %2013 = vmatprep.subr.bf16.mxu0 %v2899_v41 }
 0x175   :  { %2045 = vmatprep.subr.bf16.mxu1 %v2902_v47 }
 0x177   :  { %2015 = vmatpush1.bf16.msra.mxu0 %v2906_v55 }
 0x178   :  { %2047 = vmatpush1.bf16.msra.mxu1 %v2914_v59  ;;  %2017 = vmatprep.subr.bf16.mxu0 %v2916_v60 }
 0x179   :  { %2049 = vmatprep.subr.bf16.mxu1 %v2919_v3 }
 0x17b   :  { %2019 = vmatpush1.bf16.msra.mxu0 %v2923_v17 }
 0x17c   :  { %2051 = vmatpush1.bf16.msra.mxu1 %v2931_v19  ;;  %2021 = vmatprep.subr.bf16.mxu0 %v2933_v23 }
 0x17d   :  { %2053 = vmatprep.subr.bf16.mxu1 %v2936_v28 }
 0x17f   :  { %2023 = vmatpush1.bf16.msra.mxu0 %v2940_v33 }
 0x180   :  { %2055 = vmatpush1.bf16.msra.mxu1 %v2945_v34  ;;  %2057 = vmatprep.subr.bf16.mxu0 %v2819_v26 }
 0x181   :  { %2089 = vmatprep.subr.bf16.mxu1 %v2821_v30 }
 0x1e2   :  { %v253_v38 = vpop.permute.xlu0 %252 }
 0x1e3   :  { %v2953_v42 = vadd.f32 %v253_v38, %v245_v37 }
 0x1e5   :  { %2511 = vtanh.f32 %v2953_v42 }
 0x1e6   :  { %2513 = vpow2.f32 %v1957_v46 }
 0x1ef   :  { %v2512_v45 = vpop.eup %2511 }
 0x1f0   :  { %258 = vrot.lane.b32.xlu1 %v2512_v45, %s2725_s1  ;;  %v2514_v49 = vpop.eup %2513 }
 0x1f1   :  { %v239_v50 = vadd.f32 1.0, %v2514_v49 }
 0x1f3   :  { %2515 = vrcp.f32 %v239_v50 }
 0x1fd   :  { %v2516_v51 = vpop.eup %2515 }
 0x262   :  { %v259_v53 = vpop.permute.xlu1 %258 }
 0x263   :  { %v261_v54 = vmul.f32 %v2516_v51, %v259_v53 }
 0x265   :  { %1958 = vmatmul.mubr.msk.f32.vlgmr.msra.gmra.mrb[2].mxu0 %vm262_vm1, %v261_v54  ;;  %1959 = vmatmul.mubr.msk.f32.vlgmr.msra.gmra.mrb[0].mxu1 %vm262_vm1, %v261_v54 }
 0x266   :  { %2059 = vmatpush1.bf16.msra.mxu0 %v2823_v31  ;;  %2091 = vmatpush1.bf16.msra.mxu1 %v2829_v35 }
 0x267   :  { %2061 = vmatprep.subr.bf16.mxu0 %v2834_v39  ;;  %2093 = vmatprep.subr.bf16.mxu1 %v2837_v43 }
 0x268   :  { %605 = vmatprep.mubr.f32.mxu0 %v2724_v1  ;;  %676 = vmatprep.mubr.f32.mxu1 %v2724_v1 }
 0x26a   :  { %2063 = vmatpush1.bf16.msra.mxu0 %v2839_v44  ;;  %2095 = vmatpush1.bf16.msra.mxu1 %v2846_v48 }
 0x26b   :  { %2065 = vmatprep.subr.bf16.mxu0 %v2850_v52  ;;  %2097 = vmatprep.subr.bf16.mxu1 %v2853_v56 }
 0x26e   :  { %2067 = vmatpush1.bf16.msra.mxu0 %v2855_v57  ;;  %2099 = vmatpush1.bf16.msra.mxu1 %v2863_v61 }
 0x26f   :  { %2069 = vmatprep.subr.bf16.mxu0 %v2866_v2  ;;  %2101 = vmatprep.subr.bf16.mxu1 %v2869_v8 }
 0x272   :  { %2071 = vmatpush1.bf16.msra.mxu0 %v2875_v16  ;;  %2103 = vmatpush1.bf16.msra.mxu1 %v2880_v21 }
 0x273   :  { %2073 = vmatprep.subr.bf16.mxu0 %v2882_v22  ;;  %2105 = vmatprep.subr.bf16.mxu1 %v2885_v27 }
 0x276   :  { %2075 = vmatpush1.bf16.msra.mxu0 %v2889_v36  ;;  %2107 = vmatpush1.bf16.msra.mxu1 %v2897_v40 }
 0x277   :  { %2077 = vmatprep.subr.bf16.mxu0 %v2899_v41  ;;  %2109 = vmatprep.subr.bf16.mxu1 %v2902_v47 }
 0x27a   :  { %2079 = vmatpush1.bf16.msra.mxu0 %v2906_v55  ;;  %2111 = vmatpush1.bf16.msra.mxu1 %v2914_v59 }
 0x27b   :  { %2081 = vmatprep.subr.bf16.mxu0 %v2916_v60  ;;  %2113 = vmatprep.subr.bf16.mxu1 %v2919_v3 }
 0x27e   :  { %2083 = vmatpush1.bf16.msra.mxu0 %v2923_v17  ;;  %2115 = vmatpush1.bf16.msra.mxu1 %v2931_v19 }
 0x27f   :  { %2085 = vmatprep.subr.bf16.mxu0 %v2933_v23  ;;  %2117 = vmatprep.subr.bf16.mxu1 %v2936_v28 }
 0x282   :  { %2087 = vmatpush1.bf16.msra.mxu0 %v2940_v33  ;;  %2119 = vmatpush1.bf16.msra.mxu1 %v2945_v34 }
 0x283   :  { %2121 = vmatprep.subr.bf16.mxu0 %v2819_v26  ;;  %2153 = vmatprep.subr.bf16.mxu1 %v2821_v30 }
 0x338   :  { %v394_v20 = vpop.f32.mrb[2].mxu0  ;;  %v465_v58 = vpop.f32.mrb[0].mxu1 }
 0x339   :  { %v396_v62 = vpop.f32.mrb[3].mxu0  ;;  %v467_v0 = vpop.f32.mrb[1].mxu1  ;;  %v2472_v13 = vadd.f32 %v394_v20, %v2812_v15  ;;  %v470_v24 = vadd.f32 %v465_v58, %v3008_v18 }
 0x33a   :  { %v2473_v4 = vadd.f32 %v396_v62, %v2802_v9  ;;  %v471_v5 = vadd.f32 %v467_v0, %v2999_v63 }
 0x33b   :  { %v1962_v7 = vmul.f32 -1.442695, %v2472_v13  ;;  %v1960_v25 = vmul.f32 -1.442695, %v470_v24 }
 0x33c   :  { %2517 = vtanh.f32 %v2473_v4 }
 0x33d   :  { %2519 = vtanh.f32 %v471_v5 }
 0x33e   :  { %2521 = vpow2.f32 %v1962_v7 }
 0x33f   :  { %2523 = vpow2.f32 %v1960_v25  ;;  %v1963_v25 = vmul.f32 -1.442695, %v2473_v4 }
 0x346   :  { %v2518_v10 = vpop.eup %2517 }
 0x347   :  { %521 = vrot.lane.b32.xlu0 %v2518_v10, %s2725_s1  ;;  %v2520_v11 = vpop.eup %2519  ;;  %v1961_v10 = vmul.f32 -1.442695, %v471_v5 }
 0x348   :  { %487 = vrot.lane.b32.xlu1 %v2520_v11, %s2725_s1  ;;  %v2522_v29 = vpop.eup %2521 }
 0x349   :  { %v512_v32 = vadd.f32 1.0, %v2522_v29  ;;  %v2524_v37 = vpop.eup %2523 }
 0x34a   :  { %v478_v38 = vadd.f32 1.0, %v2524_v37 }
 0x34b   :  { %2525 = vrcp.f32 %v512_v32 }
 0x34c   :  { %2527 = vrcp.f32 %v478_v38 }
 0x355   :  { %v2526_v45 = vpop.eup %2525 }
 0x356   :  { %v2528_v6 = vpop.eup %2527  ;;  %v519_v51 = vmul.f32 %v2526_v45, %v2953_v42 }
 0x357   :  { %v485_v12 = vmul.f32 0.0, %v2528_v6 }
 0x3b9   :  { %v522_v46 = vpop.permute.xlu0 %521 }
 0x3ba   :  { %v524_v49 = vmul.f32 %v2526_v45, %v522_v46  ;;  %v488_v14 = vpop.permute.xlu1 %487 }
 0x3bb   :  { %v490_v50 = vmul.f32 %v2528_v6, %v488_v14 }
 0x3bc   :  { %526 = vrot.lane.b32.xlu0 %v524_v49, %s2725_s1 }
 0x3bd   :  { %492 = vrot.lane.b32.xlu1 %v490_v50, %s2725_s1 }
 0x42e   :  { %v527_v53 = vpop.permute.xlu0 %526 }
 0x42f   :  { %v3014_v54 = vadd.f32 %v527_v53, %v519_v51  ;;  %v493_v20 = vpop.permute.xlu1 %492 }
 0x430   :  { %v3017_v58 = vadd.f32 %v493_v20, %v485_v12 }
 0x431   :  { %2529 = vtanh.f32 %v3014_v54 }
 0x432   :  { %2531 = vtanh.f32 %v3017_v58 }
 0x433   :  { %2533 = vpow2.f32 %v1961_v10 }
 0x43b   :  { %v2530_v62 = vpop.eup %2529 }
 0x43c   :  { %532 = vrot.lane.b32.xlu0 %v2530_v62, %s2725_s1  ;;  %v2532_v0 = vpop.eup %2531 }
 0x43d   :  { %498 = vrot.lane.b32.xlu1 %v2532_v0, %s2725_s1  ;;  %v2534_v42 = vpop.eup %2533 }
 0x43e   :  { %v479_v11 = vadd.f32 1.0, %v2534_v42 }
 0x440   :  { %2535 = vrcp.f32 %v479_v11 }
 0x441   :  { %2537 = vpow2.f32 %v1963_v25 }
 0x44a   :  { %v2536_v13 = vpop.eup %2535 }
 0x44b   :  { %v2538_v29 = vpop.eup %2537 }
 0x44c   :  { %v513_v32 = vadd.f32 1.0, %v2538_v29 }
 0x44e   :  { %2539 = vrcp.f32 %v513_v32 }
 0x458   :  { %v2540_v38 = vpop.eup %2539 }
 0x4ae   :  { %v533_v37 = vpop.permute.xlu0 %532 }
 0x4af   :  { %v499_v7 = vpop.permute.xlu1 %498  ;;  %v535_v45 = vmul.f32 %v2540_v38, %v533_v37 }
 0x4b0   :  { %v501_v24 = vmul.f32 %v2536_v13, %v499_v7 }
 0x4b2   :  { %537 = vrot.lane.b32.xlu1 %v501_v24, %s2725_s1 }
 0x524   :  { %v538_v46 = vpop.permute.xlu1 %537 }
 0x525   :  { %v540_v5 = vsel %vm262_vm1, %v535_v45, %v538_v46 }
 0x526   :  { %606 = vmatmul.mubr.f32.vlgmr.msra.gmra.mrb[4].mxu0 %v540_v5  ;;  %677 = vmatmul.mubr.f32.vlgmr.msra.gmra.mrb[2].mxu1 %v540_v5 }
 0x527   :  { %2123 = vmatpush1.bf16.msra.mxu0 %v2823_v31  ;;  %2155 = vmatpush1.bf16.msra.mxu1 %v2829_v35 }
 0x528   :  { %2125 = vmatprep.subr.bf16.mxu0 %v2834_v39  ;;  %2157 = vmatprep.subr.bf16.mxu1 %v2837_v43 }
 0x529   :  { %818 = vmatprep.mubr.f32.mxu0 %v2724_v1  ;;  %889 = vmatprep.mubr.f32.mxu1 %v2724_v1 }
 0x52b   :  { %2127 = vmatpush1.bf16.msra.mxu0 %v2839_v44  ;;  %2159 = vmatpush1.bf16.msra.mxu1 %v2846_v48 }
 0x52c   :  { %2129 = vmatprep.subr.bf16.mxu0 %v2850_v52  ;;  %2161 = vmatprep.subr.bf16.mxu1 %v2853_v56 }
 0x52f   :  { %2131 = vmatpush1.bf16.msra.mxu0 %v2855_v57  ;;  %2163 = vmatpush1.bf16.msra.mxu1 %v2863_v61 }
 0x530   :  { %2133 = vmatprep.subr.bf16.mxu0 %v2866_v2  ;;  %2165 = vmatprep.subr.bf16.mxu1 %v2869_v8 }
 0x533   :  { %2135 = vmatpush1.bf16.msra.mxu0 %v2875_v16  ;;  %2167 = vmatpush1.bf16.msra.mxu1 %v2880_v21 }
 0x534   :  { %2137 = vmatprep.subr.bf16.mxu0 %v2882_v22  ;;  %2169 = vmatprep.subr.bf16.mxu1 %v2885_v27 }
 0x537   :  { %2139 = vmatpush1.bf16.msra.mxu0 %v2889_v36  ;;  %2171 = vmatpush1.bf16.msra.mxu1 %v2897_v40 }
 0x538   :  { %2141 = vmatprep.subr.bf16.mxu0 %v2899_v41  ;;  %2173 = vmatprep.subr.bf16.mxu1 %v2902_v47 }
 0x53b   :  { %2143 = vmatpush1.bf16.msra.mxu0 %v2906_v55  ;;  %2175 = vmatpush1.bf16.msra.mxu1 %v2914_v59 }
 0x53c   :  { %2145 = vmatprep.subr.bf16.mxu0 %v2916_v60  ;;  %2177 = vmatprep.subr.bf16.mxu1 %v2919_v3 }
 0x53f   :  { %2147 = vmatpush1.bf16.msra.mxu0 %v2923_v17  ;;  %2179 = vmatpush1.bf16.msra.mxu1 %v2931_v19 }
 0x540   :  { %2149 = vmatprep.subr.bf16.mxu0 %v2933_v23  ;;  %2181 = vmatprep.subr.bf16.mxu1 %v2936_v28 }
 0x543   :  { %2151 = vmatpush1.bf16.msra.mxu0 %v2940_v33  ;;  %2183 = vmatpush1.bf16.msra.mxu1 %v2945_v34 }
 0x544   :  { %2185 = vmatprep.subr.bf16.mxu0 %v2819_v26  ;;  %2217 = vmatprep.subr.bf16.mxu1 %v2821_v30 }
 0x5f9   :  { %v607_v4 = vpop.f32.mrb[4].mxu0  ;;  %v678_v49 = vpop.f32.mrb[2].mxu1 }
 0x5fa   :  { %v609_v6 = vpop.f32.mrb[5].mxu0  ;;  %v680_v14 = vpop.f32.mrb[3].mxu1  ;;  %v2474_v20 = vadd.f32 %v607_v4, %v2812_v15  ;;  %v683_v0 = vadd.f32 %v678_v49, %v3008_v18 }
 0x5fb   :  { %v2475_v50 = vadd.f32 %v609_v6, %v2802_v9  ;;  %v684_v51 = vadd.f32 %v680_v14, %v2999_v63 }
 0x5fc   :  { %v1966_v62 = vmul.f32 -1.442695, %v2474_v20  ;;  %v1964_v10 = vmul.f32 -1.442695, %v683_v0 }
 0x5fd   :  { %2541 = vtanh.f32 %v2475_v50 }
 0x5fe   :  { %2543 = vtanh.f32 %v684_v51 }
 0x5ff   :  { %2545 = vpow2.f32 %v1966_v62 }
 0x600   :  { %2547 = vpow2.f32 %v1964_v10 }
 0x607   :  { %v2542_v53 = vpop.eup %2541 }
 0x608   :  { %734 = vrot.lane.b32.xlu1 %v2542_v53, %s2725_s1  ;;  %v2544_v12 = vpop.eup %2543 }
 0x609   :  { %700 = vrot.lane.b32.xlu0 %v2544_v12, %s2725_s1  ;;  %v2546_v42 = vpop.eup %2545  ;;  %v1965_v12 = vmul.f32 -1.442695, %v684_v51 }
 0x60a   :  { %v725_v11 = vadd.f32 1.0, %v2546_v42  ;;  %v2548_v13 = vpop.eup %2547 }
 0x60b   :  { %v691_v7 = vadd.f32 1.0, %v2548_v13 }
 0x60c   :  { %2549 = vrcp.f32 %v725_v11 }
 0x60d   :  { %2551 = vrcp.f32 %v691_v7 }
 0x616   :  { %v2550_v24 = vpop.eup %2549 }
 0x617   :  { %v2552_v32 = vpop.eup %2551  ;;  %v732_v45 = vmul.f32 %v2550_v24, %v3014_v54 }
 0x618   :  { %v698_v4 = vmul.f32 %v2552_v32, %v3017_v58  ;;  %v1967_v58 = vmul.f32 -1.442695, %v2475_v50 }
 0x67a   :  { %v735_v25 = vpop.permute.xlu1 %734 }
 0x67b   :  { %v737_v29 = vmul.f32 %v2550_v24, %v735_v25  ;;  %v701_v37 = vpop.permute.xlu0 %700 }
 0x67c   :  { %v703_v38 = vmul.f32 %v2552_v32, %v701_v37 }
 0x67d   :  { %739 = vrot.lane.b32.xlu1 %v737_v29, %s2725_s1 }
 0x67e   :  { %705 = vrot.lane.b32.xlu0 %v703_v38, %s2725_s1 }
 0x6ef   :  { %v740_v46 = vpop.permute.xlu1 %739 }
 0x6f0   :  { %v3067_v5 = vadd.f32 %v740_v46, %v732_v45  ;;  %v706_v49 = vpop.permute.xlu0 %705 }
 0x6f1   :  { %v3071_v6 = vadd.f32 %v706_v49, %v698_v4 }
 0x6f2   :  { %2553 = vtanh.f32 %v3067_v5 }
 0x6f3   :  { %2555 = vtanh.f32 %v3071_v6 }
 0x6f4   :  { %2557 = vpow2.f32 %v1965_v12 }
 0x6fc   :  { %v2554_v14 = vpop.eup %2553 }
 0x6fd   :  { %745 = vrot.lane.b32.xlu1 %v2554_v14, %s2725_s1  ;;  %v2556_v53 = vpop.eup %2555 }
 0x6fe   :  { %711 = vrot.lane.b32.xlu0 %v2556_v53, %s2725_s1  ;;  %v2558_v54 = vpop.eup %2557 }
 0x6ff   :  { %v692_v20 = vadd.f32 1.0, %v2558_v54 }
 0x701   :  { %2559 = vrcp.f32 %v692_v20 }
 0x702   :  { %2561 = vpow2.f32 %v1967_v58 }
 0x70b   :  { %v2560_v62 = vpop.eup %2559 }
 0x70c   :  { %v2562_v42 = vpop.eup %2561 }
 0x70d   :  { %v726_v11 = vadd.f32 1.0, %v2562_v42 }
 0x70f   :  { %2563 = vrcp.f32 %v726_v11 }
 0x719   :  { %v2564_v7 = vpop.eup %2563 }
 0x76f   :  { %v746_v13 = vpop.permute.xlu1 %745 }
 0x770   :  { %v712_v0 = vpop.permute.xlu0 %711  ;;  %v748_v24 = vmul.f32 %v2564_v7, %v746_v13 }
 0x771   :  { %v714_v10 = vmul.f32 %v2560_v62, %v712_v0 }
 0x773   :  { %750 = vrot.lane.b32.xlu0 %v714_v10, %s2725_s1 }
 0x7e5   :  { %v751_v25 = vpop.permute.xlu0 %750 }
 0x7e6   :  { %v753_v51 = vsel %vm262_vm1, %v748_v24, %v751_v25 }
 0x7e7   :  { %819 = vmatmul.mubr.f32.vlgmr.msra.gmra.mrb[6].mxu0 %v753_v51  ;;  %890 = vmatmul.mubr.f32.vlgmr.msra.gmra.mrb[4].mxu1 %v753_v51 }
 0x7e8   :  { %2187 = vmatpush1.bf16.msra.mxu0 %v2823_v31  ;;  %2219 = vmatpush1.bf16.msra.mxu1 %v2829_v35 }
 0x7e9   :  { %2189 = vmatprep.subr.bf16.mxu0 %v2834_v39  ;;  %2221 = vmatprep.subr.bf16.mxu1 %v2837_v43 }
 0x7ea   :  { %1031 = vmatprep.mubr.f32.mxu0 %v2724_v1  ;;  %1102 = vmatprep.mubr.f32.mxu1 %v2724_v1 }
 0x7ec   :  { %2191 = vmatpush1.bf16.msra.mxu0 %v2839_v44  ;;  %2223 = vmatpush1.bf16.msra.mxu1 %v2846_v48 }
 0x7ed   :  { %2193 = vmatprep.subr.bf16.mxu0 %v2850_v52  ;;  %2225 = vmatprep.subr.bf16.mxu1 %v2853_v56 }
 0x7f0   :  { %2195 = vmatpush1.bf16.msra.mxu0 %v2855_v57  ;;  %2227 = vmatpush1.bf16.msra.mxu1 %v2863_v61 }
 0x7f1   :  { %2197 = vmatprep.subr.bf16.mxu0 %v2866_v2  ;;  %2229 = vmatprep.subr.bf16.mxu1 %v2869_v8 }
 0x7f4   :  { %2199 = vmatpush1.bf16.msra.mxu0 %v2875_v16  ;;  %2231 = vmatpush1.bf16.msra.mxu1 %v2880_v21 }
 0x7f5   :  { %2201 = vmatprep.subr.bf16.mxu0 %v2882_v22  ;;  %2233 = vmatprep.subr.bf16.mxu1 %v2885_v27 }
 0x7f8   :  { %2203 = vmatpush1.bf16.msra.mxu0 %v2889_v36  ;;  %2235 = vmatpush1.bf16.msra.mxu1 %v2897_v40 }
 0x7f9   :  { %2205 = vmatprep.subr.bf16.mxu0 %v2899_v41  ;;  %2237 = vmatprep.subr.bf16.mxu1 %v2902_v47 }
 0x7fc   :  { %2207 = vmatpush1.bf16.msra.mxu0 %v2906_v55  ;;  %2239 = vmatpush1.bf16.msra.mxu1 %v2914_v59 }
 0x7fd   :  { %2209 = vmatprep.subr.bf16.mxu0 %v2916_v60  ;;  %2241 = vmatprep.subr.bf16.mxu1 %v2919_v3 }
 0x800   :  { %2211 = vmatpush1.bf16.msra.mxu0 %v2923_v17  ;;  %2243 = vmatpush1.bf16.msra.mxu1 %v2931_v19 }
 0x801   :  { %2213 = vmatprep.subr.bf16.mxu0 %v2933_v23  ;;  %2245 = vmatprep.subr.bf16.mxu1 %v2936_v28 }
 0x804   :  { %2215 = vmatpush1.bf16.msra.mxu0 %v2940_v33  ;;  %2247 = vmatpush1.bf16.msra.mxu1 %v2945_v34 }
 0x805   :  { %2249 = vmatprep.subr.bf16.mxu0 %v2819_v26  ;;  %2281 = vmatprep.subr.bf16.mxu1 %v2821_v30 }
 0x8ba   :  { %v820_v50 = vpop.f32.mrb[6].mxu0  ;;  %v891_v29 = vpop.f32.mrb[4].mxu1 }
 0x8bb   :  { %v822_v32 = vpop.f32.mrb[7].mxu0  ;;  %v893_v37 = vpop.f32.mrb[5].mxu1  ;;  %v2476_v49 = vadd.f32 %v820_v50, %v2812_v15  ;;  %v896_v53 = vadd.f32 %v891_v29, %v3008_v18 }
 0x8bc   :  { %v2477_v38 = vadd.f32 %v822_v32, %v2802_v9  ;;  %v897_v45 = vadd.f32 %v893_v37, %v2999_v63 }
 0x8bd   :  { %v1970_v14 = vmul.f32 -1.442695, %v2476_v49  ;;  %v1968_v12 = vmul.f32 -1.442695, %v896_v53 }
 0x8be   :  { %2565 = vtanh.f32 %v2477_v38 }
 0x8bf   :  { %2567 = vtanh.f32 %v897_v45 }
 0x8c0   :  { %2569 = vpow2.f32 %v1970_v14 }
 0x8c1   :  { %2571 = vpow2.f32 %v1968_v12 }
 0x8c8   :  { %v2566_v46 = vpop.eup %2565 }
 0x8c9   :  { %947 = vrot.lane.b32.xlu0 %v2566_v46, %s2725_s1  ;;  %v2568_v4 = vpop.eup %2567 }
 0x8ca   :  { %913 = vrot.lane.b32.xlu1 %v2568_v4, %s2725_s1  ;;  %v2570_v54 = vpop.eup %2569  ;;  %v1969_v4 = vmul.f32 -1.442695, %v897_v45 }
 0x8cb   :  { %v938_v20 = vadd.f32 1.0, %v2570_v54  ;;  %v2572_v62 = vpop.eup %2571 }
 0x8cc   :  { %v904_v0 = vadd.f32 1.0, %v2572_v62 }
 0x8cd   :  { %2573 = vrcp.f32 %v938_v20 }
 0x8ce   :  { %2575 = vrcp.f32 %v904_v0 }
 0x8d7   :  { %v2574_v10 = vpop.eup %2573 }
 0x8d8   :  { %v2576_v11 = vpop.eup %2575  ;;  %v945_v24 = vmul.f32 %v2574_v10, %v3067_v5 }
 0x8d9   :  { %v911_v50 = vmul.f32 %v2576_v11, %v3071_v6  ;;  %v1971_v6 = vmul.f32 -1.442695, %v2477_v38 }
 0x93b   :  { %v948_v58 = vpop.permute.xlu0 %947 }
 0x93c   :  { %v950_v42 = vmul.f32 %v2574_v10, %v948_v58  ;;  %v914_v13 = vpop.permute.xlu1 %913 }
 0x93d   :  { %v916_v7 = vmul.f32 %v2576_v11, %v914_v13 }
 0x93e   :  { %952 = vrot.lane.b32.xlu0 %v950_v42, %s2725_s1 }
 0x93f   :  { %918 = vrot.lane.b32.xlu1 %v916_v7, %s2725_s1 }
 0x9b0   :  { %v953_v25 = vpop.permute.xlu0 %952 }
 0x9b1   :  { %v3121_v51 = vadd.f32 %v953_v25, %v945_v24  ;;  %v919_v29 = vpop.permute.xlu1 %918 }
 0x9b2   :  { %v3125_v32 = vadd.f32 %v919_v29, %v911_v50 }
 0x9b3   :  { %2577 = vtanh.f32 %v3121_v51 }
 0x9b4   :  { %2579 = vtanh.f32 %v3125_v32 }
 0x9b5   :  { %2581 = vpow2.f32 %v1969_v4 }
 0x9bd   :  { %v2578_v37 = vpop.eup %2577 }
 0x9be   :  { %958 = vrot.lane.b32.xlu0 %v2578_v37, %s2725_s1  ;;  %v2580_v46 = vpop.eup %2579 }
 0x9bf   :  { %924 = vrot.lane.b32.xlu1 %v2580_v46, %s2725_s1  ;;  %v2582_v5 = vpop.eup %2581 }
 0x9c0   :  { %v905_v49 = vadd.f32 1.0, %v2582_v5 }
 0x9c2   :  { %2583 = vrcp.f32 %v905_v49 }
 0x9c3   :  { %2585 = vpow2.f32 %v1971_v6 }
 0x9cc   :  { %v2584_v14 = vpop.eup %2583 }
 0x9cd   :  { %v2586_v54 = vpop.eup %2585 }
 0x9ce   :  { %v939_v20 = vadd.f32 1.0, %v2586_v54 }
 0x9d0   :  { %2587 = vrcp.f32 %v939_v20 }
 0x9da   :  { %v2588_v0 = vpop.eup %2587 }
 0xa30   :  { %v959_v62 = vpop.permute.xlu0 %958 }
 0xa31   :  { %v925_v53 = vpop.permute.xlu1 %924  ;;  %v961_v10 = vmul.f32 %v2588_v0, %v959_v62 }
 0xa32   :  { %v927_v12 = vmul.f32 %v2584_v14, %v925_v53 }
 0xa34   :  { %963 = vrot.lane.b32.xlu1 %v927_v12, %s2725_s1 }
 0xaa6   :  { %v964_v58 = vpop.permute.xlu1 %963 }
 0xaa7   :  { %v966_v45 = vsel %vm262_vm1, %v961_v10, %v964_v58 }
 0xaa8   :  { %1032 = vmatmul.mubr.f32.vlgmr.msra.gmra.mrb[8].mxu0 %v966_v45  ;;  %1103 = vmatmul.mubr.f32.vlgmr.msra.gmra.mrb[6].mxu1 %v966_v45 }
 0xaa9   :  { %2251 = vmatpush1.bf16.msra.mxu0 %v2823_v31  ;;  %2283 = vmatpush1.bf16.msra.mxu1 %v2829_v35 }
 0xaaa   :  { %2253 = vmatprep.subr.bf16.mxu0 %v2834_v39  ;;  %2285 = vmatprep.subr.bf16.mxu1 %v2837_v43 }
 0xaab   :  { %1244 = vmatprep.mubr.f32.mxu0 %v2724_v1  ;;  %1315 = vmatprep.mubr.f32.mxu1 %v2724_v1 }
 0xaad   :  { %2255 = vmatpush1.bf16.msra.mxu0 %v2839_v44  ;;  %2287 = vmatpush1.bf16.msra.mxu1 %v2846_v48 }
 0xaae   :  { %2257 = vmatprep.subr.bf16.mxu0 %v2850_v52  ;;  %2289 = vmatprep.subr.bf16.mxu1 %v2853_v56 }
 0xab1   :  { %2259 = vmatpush1.bf16.msra.mxu0 %v2855_v57  ;;  %2291 = vmatpush1.bf16.msra.mxu1 %v2863_v61 }
 0xab2   :  { %2261 = vmatprep.subr.bf16.mxu0 %v2866_v2  ;;  %2293 = vmatprep.subr.bf16.mxu1 %v2869_v8 }
 0xab5   :  { %2263 = vmatpush1.bf16.msra.mxu0 %v2875_v16  ;;  %2295 = vmatpush1.bf16.msra.mxu1 %v2880_v21 }
 0xab6   :  { %2265 = vmatprep.subr.bf16.mxu0 %v2882_v22  ;;  %2297 = vmatprep.subr.bf16.mxu1 %v2885_v27 }
 0xab9   :  { %2267 = vmatpush1.bf16.msra.mxu0 %v2889_v36  ;;  %2299 = vmatpush1.bf16.msra.mxu1 %v2897_v40 }
 0xaba   :  { %2269 = vmatprep.subr.bf16.mxu0 %v2899_v41  ;;  %2301 = vmatprep.subr.bf16.mxu1 %v2902_v47 }
 0xabd   :  { %2271 = vmatpush1.bf16.msra.mxu0 %v2906_v55  ;;  %2303 = vmatpush1.bf16.msra.mxu1 %v2914_v59 }
 0xabe   :  { %2273 = vmatprep.subr.bf16.mxu0 %v2916_v60  ;;  %2305 = vmatprep.subr.bf16.mxu1 %v2919_v3 }
 0xac1   :  { %2275 = vmatpush1.bf16.msra.mxu0 %v2923_v17  ;;  %2307 = vmatpush1.bf16.msra.mxu1 %v2931_v19 }
 0xac2   :  { %2277 = vmatprep.subr.bf16.mxu0 %v2933_v23  ;;  %2309 = vmatprep.subr.bf16.mxu1 %v2936_v28 }
 0xac5   :  { %2279 = vmatpush1.bf16.msra.mxu0 %v2940_v33  ;;  %2311 = vmatpush1.bf16.msra.mxu1 %v2945_v34 }
 0xac6   :  { %2313 = vmatprep.subr.bf16.mxu0 %v2819_v26  ;;  %2345 = vmatprep.subr.bf16.mxu1 %v2821_v30 }
 0xb7b   :  { %v1033_v38 = vpop.f32.mrb[8].mxu0  ;;  %v1104_v42 = vpop.f32.mrb[6].mxu1 }
 0xb7c   :  { %v1035_v11 = vpop.f32.mrb[9].mxu0  ;;  %v1106_v13 = vpop.f32.mrb[7].mxu1  ;;  %v2478_v29 = vadd.f32 %v1033_v38, %v2812_v15  ;;  %v1109_v46 = vadd.f32 %v1104_v42, %v3008_v18 }
 0xb7d   :  { %v2479_v7 = vadd.f32 %v1035_v11, %v2802_v9  ;;  %v1110_v24 = vadd.f32 %v1106_v13, %v2999_v63 }
 0xb7e   :  { %v1974_v37 = vmul.f32 -1.442695, %v2478_v29  ;;  %v1972_v4 = vmul.f32 -1.442695, %v1109_v46 }
 0xb7f   :  { %2589 = vtanh.f32 %v2479_v7 }
 0xb80   :  { %2591 = vtanh.f32 %v1110_v24 }
 0xb81   :  { %2593 = vpow2.f32 %v1974_v37 }
 0xb82   :  { %2595 = vpow2.f32 %v1972_v4 }
 0xb89   :  { %v2590_v25 = vpop.eup %2589 }
 0xb8a   :  { %1160 = vrot.lane.b32.xlu1 %v2590_v25, %s2725_s1  ;;  %v2592_v50 = vpop.eup %2591 }
 0xb8b   :  { %1126 = vrot.lane.b32.xlu0 %v2592_v50, %s2725_s1  ;;  %v2594_v5 = vpop.eup %2593  ;;  %v1973_v50 = vmul.f32 -1.442695, %v1110_v24 }
 0xb8c   :  { %v1151_v49 = vadd.f32 1.0, %v2594_v5  ;;  %v2596_v14 = vpop.eup %2595 }
 0xb8d   :  { %v1117_v53 = vadd.f32 1.0, %v2596_v14 }
 0xb8e   :  { %2597 = vrcp.f32 %v1151_v49 }
 0xb8f   :  { %2599 = vrcp.f32 %v1117_v53 }
 0xb98   :  { %v2598_v12 = vpop.eup %2597 }
 0xb99   :  { %v2600_v20 = vpop.eup %2599  ;;  %v1158_v10 = vmul.f32 %v2598_v12, %v3121_v51 }
 0xb9a   :  { %v1124_v38 = vmul.f32 %v2600_v20, %v3125_v32  ;;  %v1975_v32 = vmul.f32 -1.442695, %v2479_v7 }
 0xbfc   :  { %v1161_v6 = vpop.permute.xlu1 %1160 }
 0xbfd   :  { %v1163_v54 = vmul.f32 %v2598_v12, %v1161_v6  ;;  %v1127_v62 = vpop.permute.xlu0 %1126 }
 0xbfe   :  { %v1129_v0 = vmul.f32 %v2600_v20, %v1127_v62 }
 0xbff   :  { %1165 = vrot.lane.b32.xlu1 %v1163_v54, %s2725_s1 }
 0xc00   :  { %1131 = vrot.lane.b32.xlu0 %v1129_v0, %s2725_s1 }
 0xc71   :  { %v1166_v58 = vpop.permute.xlu1 %1165 }
 0xc72   :  { %v3175_v45 = vadd.f32 %v1166_v58, %v1158_v10  ;;  %v1132_v42 = vpop.permute.xlu0 %1131 }
 0xc73   :  { %v3179_v11 = vadd.f32 %v1132_v42, %v1124_v38 }
 0xc74   :  { %2601 = vtanh.f32 %v3175_v45 }
 0xc75   :  { %2603 = vtanh.f32 %v3179_v11 }
 0xc76   :  { %2605 = vpow2.f32 %v1973_v50 }
 0xc7e   :  { %v2602_v13 = vpop.eup %2601 }
 0xc7f   :  { %1171 = vrot.lane.b32.xlu1 %v2602_v13, %s2725_s1  ;;  %v2604_v25 = vpop.eup %2603 }
 0xc80   :  { %1137 = vrot.lane.b32.xlu0 %v2604_v25, %s2725_s1  ;;  %v2606_v51 = vpop.eup %2605 }
 0xc81   :  { %v1118_v29 = vadd.f32 1.0, %v2606_v51 }
 0xc83   :  { %2607 = vrcp.f32 %v1118_v29 }
 0xc84   :  { %2609 = vpow2.f32 %v1975_v32 }
 0xc8d   :  { %v2608_v37 = vpop.eup %2607 }
 0xc8e   :  { %v2610_v5 = vpop.eup %2609 }
 0xc8f   :  { %v1152_v49 = vadd.f32 1.0, %v2610_v5 }
 0xc91   :  { %2611 = vrcp.f32 %v1152_v49 }
 0xc9b   :  { %v2612_v53 = vpop.eup %2611 }
 0xcf1   :  { %v1172_v14 = vpop.permute.xlu1 %1171 }
 0xcf2   :  { %v1138_v46 = vpop.permute.xlu0 %1137  ;;  %v1174_v12 = vmul.f32 %v2612_v53, %v1172_v14 }
 0xcf3   :  { %v1140_v4 = vmul.f32 %v2608_v37, %v1138_v46 }
 0xcf5   :  { %1176 = vrot.lane.b32.xlu0 %v1140_v4, %s2725_s1 }
 0xd67   :  { %v1177_v6 = vpop.permute.xlu0 %1176 }
 0xd68   :  { %v1179_v24 = vsel %vm262_vm1, %v1174_v12, %v1177_v6 }
 0xd69   :  { %1245 = vmatmul.mubr.f32.vlgmr.msra.gmra.mrb[10].mxu0 %v1179_v24  ;;  %1316 = vmatmul.mubr.f32.vlgmr.msra.gmra.mrb[8].mxu1 %v1179_v24 }
 0xd6a   :  { %2315 = vmatpush1.bf16.msra.mxu0 %v2823_v31  ;;  %2347 = vmatpush1.bf16.msra.mxu1 %v2829_v35 }
 0xd6b   :  { %2317 = vmatprep.subr.bf16.mxu0 %v2834_v39  ;;  %2349 = vmatprep.subr.bf16.mxu1 %v2837_v43 }
 0xd6c   :  { %1457 = vmatprep.mubr.f32.mxu0 %v2724_v1  ;;  %1528 = vmatprep.mubr.f32.mxu1 %v2724_v1 }
 0xd6e   :  { %2319 = vmatpush1.bf16.msra.mxu0 %v2839_v44  ;;  %2351 = vmatpush1.bf16.msra.mxu1 %v2846_v48 }
 0xd6f   :  { %2321 = vmatprep.subr.bf16.mxu0 %v2850_v52  ;;  %2353 = vmatprep.subr.bf16.mxu1 %v2853_v56 }
 0xd72   :  { %2323 = vmatpush1.bf16.msra.mxu0 %v2855_v57  ;;  %2355 = vmatpush1.bf16.msra.mxu1 %v2863_v61 }
 0xd73   :  { %2325 = vmatprep.subr.bf16.mxu0 %v2866_v2  ;;  %2357 = vmatprep.subr.bf16.mxu1 %v2869_v8 }
 0xd76   :  { %2327 = vmatpush1.bf16.msra.mxu0 %v2875_v16  ;;  %2359 = vmatpush1.bf16.msra.mxu1 %v2880_v21 }
 0xd77   :  { %2329 = vmatprep.subr.bf16.mxu0 %v2882_v22  ;;  %2361 = vmatprep.subr.bf16.mxu1 %v2885_v27 }
 0xd7a   :  { %2331 = vmatpush1.bf16.msra.mxu0 %v2889_v36  ;;  %2363 = vmatpush1.bf16.msra.mxu1 %v2897_v40 }
 0xd7b   :  { %2333 = vmatprep.subr.bf16.mxu0 %v2899_v41  ;;  %2365 = vmatprep.subr.bf16.mxu1 %v2902_v47 }
 0xd7e   :  { %2335 = vmatpush1.bf16.msra.mxu0 %v2906_v55  ;;  %2367 = vmatpush1.bf16.msra.mxu1 %v2914_v59 }
 0xd7f   :  { %2337 = vmatprep.subr.bf16.mxu0 %v2916_v60  ;;  %2369 = vmatprep.subr.bf16.mxu1 %v2919_v3 }
 0xd82   :  { %2339 = vmatpush1.bf16.msra.mxu0 %v2923_v17  ;;  %2371 = vmatpush1.bf16.msra.mxu1 %v2931_v19 }
 0xd83   :  { %2341 = vmatprep.subr.bf16.mxu0 %v2933_v23  ;;  %2373 = vmatprep.subr.bf16.mxu1 %v2936_v28 }
 0xd86   :  { %2343 = vmatpush1.bf16.msra.mxu0 %v2940_v33  ;;  %2375 = vmatpush1.bf16.msra.mxu1 %v2945_v34 }
 0xd87   :  { %2377 = vmatprep.subr.bf16.mxu0 %v2819_v26  ;;  %2409 = vmatprep.subr.bf16.mxu1 %v2821_v30 }
 0xe3c   :  { %v1246_v7 = vpop.f32.mrb[10].mxu0  ;;  %v1317_v54 = vpop.f32.mrb[8].mxu1 }
 0xe3d   :  { %v1248_v20 = vpop.f32.mrb[11].mxu0  ;;  %v1319_v62 = vpop.f32.mrb[9].mxu1  ;;  %v2480_v26 = vadd.f32 %v1246_v7, %v2812_v15  ;;  %v1322_v13 = vadd.f32 %v1317_v54, %v3008_v18 }
 0xe3e   :  { %v2481_v0 = vadd.f32 %v1248_v20, %v2802_v9  ;;  %v1323_v10 = vadd.f32 %v1319_v62, %v2999_v63 }
 0xe3f   :  { %v1978_v42 = vmul.f32 -1.442695, %v2480_v26  ;;  %v1976_v25 = vmul.f32 -1.442695, %v1322_v13 }
 0xe40   :  { %2613 = vtanh.f32 %v2481_v0 }
 0xe41   :  { %2615 = vtanh.f32 %v1323_v10 }
 0xe42   :  { %2617 = vpow2.f32 %v1978_v42 }
 0xe43   :  { %2619 = vpow2.f32 %v1976_v25 }
 0xe4a   :  { %v2614_v58 = vpop.eup %2613 }
 0xe4b   :  { %1373 = vrot.lane.b32.xlu0 %v2614_v58, %s2725_s1  ;;  %v2616_v38 = vpop.eup %2615  ;;  %v1977_v58 = vmul.f32 -1.442695, %v1323_v10 }
 0xe4c   :  { %1339 = vrot.lane.b32.xlu1 %v2616_v38, %s2725_s1  ;;  %v2618_v50 = vpop.eup %2617 }
 0xe4d   :  { %v1364_v51 = vadd.f32 1.0, %v2618_v50  ;;  %v2620_v29 = vpop.eup %2619 }
 0xe4e   :  { %v1330_v37 = vadd.f32 1.0, %v2620_v29 }
 0xe4f   :  { %2621 = vrcp.f32 %v1364_v51 }
 0xe50   :  { %2623 = vrcp.f32 %v1330_v37 }
 0xe59   :  { %v2622_v46 = vpop.eup %2621 }
 0xe5a   :  { %v2624_v5 = vpop.eup %2623  ;;  %v1371_v53 = vmul.f32 %v2622_v46, %v3175_v45 }
 0xe5b   :  { %v1337_v24 = vmul.f32 %v2624_v5, %v3179_v11  ;;  %v1979_v11 = vmul.f32 -1.442695, %v2481_v0 }
 0xebd   :  { %v1374_v4 = vpop.permute.xlu0 %1373 }
 0xebe   :  { %v1376_v32 = vmul.f32 %v2622_v46, %v1374_v4  ;;  %v1340_v49 = vpop.permute.xlu1 %1339 }
 0xebf   :  { %v1342_v14 = vmul.f32 %v2624_v5, %v1340_v49 }
 0xec0   :  { %1378 = vrot.lane.b32.xlu0 %v1376_v32, %s2725_s1 }
 0xec1   :  { %1344 = vrot.lane.b32.xlu1 %v1342_v14, %s2725_s1 }
 0xf32   :  { %v1379_v12 = vpop.permute.xlu0 %1378 }
 0xf33   :  { %v3229_v6 = vadd.f32 %v1379_v12, %v1371_v53  ;;  %v1345_v7 = vpop.permute.xlu1 %1344 }
 0xf34   :  { %v3233_v54 = vadd.f32 %v1345_v7, %v1337_v24 }
 0xf35   :  { %2625 = vtanh.f32 %v3229_v6 }
 0xf36   :  { %2627 = vtanh.f32 %v3233_v54 }
 0xf37   :  { %2629 = vpow2.f32 %v1977_v58 }
 0xf3f   :  { %v2626_v20 = vpop.eup %2625 }
 0xf40   :  { %1384 = vrot.lane.b32.xlu0 %v2626_v20, %s2725_s1  ;;  %v2628_v62 = vpop.eup %2627 }
 0xf41   :  { %1350 = vrot.lane.b32.xlu1 %v2628_v62, %s2725_s1  ;;  %v2630_v45 = vpop.eup %2629 }
 0xf42   :  { %v1331_v38 = vadd.f32 1.0, %v2630_v45 }
 0xf44   :  { %2631 = vrcp.f32 %v1331_v38 }
 0xf45   :  { %2633 = vpow2.f32 %v1979_v11 }
 0xf4e   :  { %v2632_v26 = vpop.eup %2631 }
 0xf4f   :  { %v2634_v25 = vpop.eup %2633 }
 0xf50   :  { %v1365_v50 = vadd.f32 1.0, %v2634_v25 }
 0xf52   :  { %2635 = vrcp.f32 %v1365_v50 }
 0xf5c   :  { %v2636_v29 = vpop.eup %2635 }
 0xfb2   :  { %v1385_v51 = vpop.permute.xlu0 %1384 }
 0xfb3   :  { %v1351_v42 = vpop.permute.xlu1 %1350  ;;  %v1387_v37 = vmul.f32 %v2636_v29, %v1385_v51 }
 0xfb4   :  { %v1353_v13 = vmul.f32 %v2632_v26, %v1351_v42 }
 0xfb6   :  { %1389 = vrot.lane.b32.xlu1 %v1353_v13, %s2725_s1 }
0x1028   :  { %v1390_v46 = vpop.permute.xlu1 %1389 }
0x1029   :  { %v1392_v10 = vsel %vm262_vm1, %v1387_v37, %v1390_v46 }
0x102a   :  { %1458 = vmatmul.mubr.f32.vlgmr.msra.gmra.mrb[12].mxu0 %v1392_v10  ;;  %1529 = vmatmul.mubr.f32.vlgmr.msra.gmra.mrb[10].mxu1 %v1392_v10 }
0x102b   :  { %2379 = vmatpush1.bf16.msra.mxu0 %v2823_v31  ;;  %2411 = vmatpush1.bf16.msra.mxu1 %v2829_v35 }
0x102c   :  { %2381 = vmatprep.subr.bf16.mxu0 %v2834_v39  ;;  %2413 = vmatprep.subr.bf16.mxu1 %v2837_v43 }
0x102d   :  { %1670 = vmatprep.mubr.f32.mxu0 %v2724_v1  ;;  %1741 = vmatprep.mubr.f32.mxu1 %v2724_v1 }
0x102f   :  { %2383 = vmatpush1.bf16.msra.mxu0 %v2839_v44  ;;  %2415 = vmatpush1.bf16.msra.mxu1 %v2846_v48 }
0x1030   :  { %2385 = vmatprep.subr.bf16.mxu0 %v2850_v52  ;;  %2417 = vmatprep.subr.bf16.mxu1 %v2853_v56 }
0x1033   :  { %2387 = vmatpush1.bf16.msra.mxu0 %v2855_v57  ;;  %2419 = vmatpush1.bf16.msra.mxu1 %v2863_v61 }
0x1034   :  { %2389 = vmatprep.subr.bf16.mxu0 %v2866_v2  ;;  %2421 = vmatprep.subr.bf16.mxu1 %v2869_v8 }
0x1037   :  { %2391 = vmatpush1.bf16.msra.mxu0 %v2875_v16  ;;  %2423 = vmatpush1.bf16.msra.mxu1 %v2880_v21 }
0x1038   :  { %2393 = vmatprep.subr.bf16.mxu0 %v2882_v22  ;;  %2425 = vmatprep.subr.bf16.mxu1 %v2885_v27 }
0x103b   :  { %2395 = vmatpush1.bf16.msra.mxu0 %v2889_v36  ;;  %2427 = vmatpush1.bf16.msra.mxu1 %v2897_v40 }
0x103c   :  { %2397 = vmatprep.subr.bf16.mxu0 %v2899_v41  ;;  %2429 = vmatprep.subr.bf16.mxu1 %v2902_v47 }
0x103f   :  { %2399 = vmatpush1.bf16.msra.mxu0 %v2906_v55  ;;  %2431 = vmatpush1.bf16.msra.mxu1 %v2914_v59 }
0x1040   :  { %2401 = vmatprep.subr.bf16.mxu0 %v2916_v60  ;;  %2433 = vmatprep.subr.bf16.mxu1 %v2919_v3 }
0x1043   :  { %2403 = vmatpush1.bf16.msra.mxu0 %v2923_v17  ;;  %2435 = vmatpush1.bf16.msra.mxu1 %v2931_v19 }
0x1044   :  { %2405 = vmatprep.subr.bf16.mxu0 %v2933_v23  ;;  %2437 = vmatprep.subr.bf16.mxu1 %v2936_v28 }
0x1047   :  { %2407 = vmatpush1.bf16.msra.mxu0 %v2940_v33  ;;  %2439 = vmatpush1.bf16.msra.mxu1 %v2945_v34 }
0x1048   :  { %2441 = vmatprep.subr.bf16.mxu1 %v2821_v30 }
0x10fd   :  { %v1459_v31 = vpop.f32.mrb[12].mxu0  ;;  %v1530_v39 = vpop.f32.mrb[10].mxu1 }
0x10fe   :  { %v1461_v44 = vpop.f32.mrb[13].mxu0  ;;  %v1532_v52 = vpop.f32.mrb[11].mxu1  ;;  %v2482_v36 = vadd.f32 %v1459_v31, %v2812_v15  ;;  %v1535_v30 = vadd.f32 %v1530_v39, %v3008_v18 }
0x10ff   :  { %v2483_v57 = vadd.f32 %v1461_v44, %v2802_v9  ;;  %v1536_v2 = vadd.f32 %v1532_v52, %v2999_v63 }
0x1100   :  { %v1982_v41 = vmul.f32 -1.442695, %v2482_v36  ;;  %v1980_v55 = vmul.f32 -1.442695, %v1535_v30 }
0x1101   :  { %2637 = vtanh.f32 %v2483_v57  ;;  %v1981_v38 = vmul.f32 -1.442695, %v1536_v2 }
0x1102   :  { %2639 = vtanh.f32 %v1536_v2 }
0x1103   :  { %2641 = vpow2.f32 %v1982_v41 }
0x1104   :  { %2643 = vpow2.f32 %v1980_v55 }
0x110b   :  { %v2638_v16 = vpop.eup %2637 }
0x110c   :  { %1586 = vrot.lane.b32.xlu1 %v2638_v16, %s2725_s1  ;;  %v2640_v22 = vpop.eup %2639 }
0x110d   :  { %1552 = vrot.lane.b32.xlu0 %v2640_v22, %s2725_s1  ;;  %v2642_v60 = vpop.eup %2641 }
0x110e   :  { %v1577_v17 = vadd.f32 1.0, %v2642_v60  ;;  %v2644_v23 = vpop.eup %2643 }
0x110f   :  { %v1543_v33 = vadd.f32 1.0, %v2644_v23 }
0x1110   :  { %2645 = vrcp.f32 %v1577_v17 }
0x1111   :  { %2647 = vrcp.f32 %v1543_v33 }
0x111a   :  { %v2646_v0 = vpop.eup %2645 }
0x111b   :  { %v2648_v5 = vpop.eup %2647  ;;  %v1584_v53 = vmul.f32 %v2646_v0, %v3229_v6 }
0x111c   :  { %v1550_v7 = vmul.f32 %v2648_v5, %v3233_v54  ;;  %v1983_v54 = vmul.f32 -1.442695, %v2483_v57 }
0x117e   :  { %v1587_v4 = vpop.permute.xlu1 %1586 }
0x117f   :  { %v1589_v32 = vmul.f32 %v2646_v0, %v1587_v4  ;;  %v1553_v49 = vpop.permute.xlu0 %1552 }
0x1180   :  { %v1555_v14 = vmul.f32 %v2648_v5, %v1553_v49 }
0x1181   :  { %1591 = vrot.lane.b32.xlu1 %v1589_v32, %s2725_s1 }
0x1182   :  { %1557 = vrot.lane.b32.xlu0 %v1555_v14, %s2725_s1 }
0x11f3   :  { %v1592_v12 = vpop.permute.xlu1 %1591 }
0x11f4   :  { %v3282_v24 = vadd.f32 %v1592_v12, %v1584_v53  ;;  %v1558_v20 = vpop.permute.xlu0 %1557 }
0x11f5   :  { %v3286_v62 = vadd.f32 %v1558_v20, %v1550_v7 }
0x11f6   :  { %2649 = vtanh.f32 %v3282_v24 }
0x11f7   :  { %2651 = vtanh.f32 %v3286_v62 }
0x11f8   :  { %2653 = vpow2.f32 %v1981_v38 }
0x1200   :  { %v2650_v58 = vpop.eup %2649 }
0x1201   :  { %1597 = vrot.lane.b32.xlu1 %v2650_v58, %s2725_s1  ;;  %v2652_v45 = vpop.eup %2651 }
0x1202   :  { %1563 = vrot.lane.b32.xlu0 %v2652_v45, %s2725_s1  ;;  %v2654_v6 = vpop.eup %2653 }
0x1203   :  { %v1544_v26 = vadd.f32 1.0, %v2654_v6 }
0x1205   :  { %2655 = vrcp.f32 %v1544_v26 }
0x1206   :  { %2657 = vpow2.f32 %v1983_v54 }
0x120f   :  { %v2656_v42 = vpop.eup %2655 }
0x1210   :  { %v2658_v25 = vpop.eup %2657 }
0x1211   :  { %v1578_v50 = vadd.f32 1.0, %v2658_v25 }
0x1213   :  { %2659 = vrcp.f32 %v1578_v50 }
0x121d   :  { %v2660_v29 = vpop.eup %2659 }
0x1273   :  { %v1598_v51 = vpop.permute.xlu1 %1597 }
0x1274   :  { %v1564_v13 = vpop.permute.xlu0 %1563  ;;  %v1600_v37 = vmul.f32 %v2660_v29, %v1598_v51 }
0x1275   :  { %v1566_v11 = vmul.f32 %v2656_v42, %v1564_v13 }
0x1277   :  { %1602 = vrot.lane.b32.xlu0 %v1566_v11, %s2725_s1 }
0x12e9   :  { %v1603_v46 = vpop.permute.xlu0 %1602 }
0x12ea   :  { %v1605_v10 = vsel %vm262_vm1, %v1600_v37, %v1603_v46 }
0x12eb   :  { %1671 = vmatmul.mubr.f32.vlgmr.msra.gmra.mrb[14].mxu0 %v1605_v10  ;;  %1742 = vmatmul.mubr.f32.vlgmr.msra.gmra.mrb[12].mxu1 %v1605_v10 }
0x12ec   :  { %2443 = vmatpush1.bf16.msra.mxu1 %v2829_v35  ;;  %1883 = vmatprep.mubr.f32.mxu1 %v2724_v1 }
0x12ed   :  { %2445 = vmatprep.subr.bf16.mxu1 %v2837_v43 }
0x12f0   :  { %2447 = vmatpush1.bf16.msra.mxu1 %v2846_v48 }
0x12f1   :  { %2449 = vmatprep.subr.bf16.mxu1 %v2853_v56 }
0x12f4   :  { %2451 = vmatpush1.bf16.msra.mxu1 %v2863_v61 }
0x12f5   :  { %2453 = vmatprep.subr.bf16.mxu1 %v2869_v8 }
0x12f8   :  { %2455 = vmatpush1.bf16.msra.mxu1 %v2880_v21 }
0x12f9   :  { %2457 = vmatprep.subr.bf16.mxu1 %v2885_v27 }
0x12fc   :  { %2459 = vmatpush1.bf16.msra.mxu1 %v2897_v40 }
0x12fd   :  { %2461 = vmatprep.subr.bf16.mxu1 %v2902_v47 }
0x1300   :  { %2463 = vmatpush1.bf16.msra.mxu1 %v2914_v59 }
0x1301   :  { %2465 = vmatprep.subr.bf16.mxu1 %v2919_v3 }
0x1304   :  { %2467 = vmatpush1.bf16.msra.mxu1 %v2931_v19 }
0x1305   :  { %2469 = vmatprep.subr.bf16.mxu1 %v2936_v28 }
0x1308   :  { %2471 = vmatpush1.bf16.msra.mxu1 %v2945_v34 }
0x13be   :  { %v1672_v1 = vpop.f32.mrb[14].mxu0  ;;  %v1743_v35 = vpop.f32.mrb[12].mxu1 }
0x13bf   :  { %v1674_v43 = vpop.f32.mrb[15].mxu0  ;;  %v1745_v48 = vpop.f32.mrb[13].mxu1  ;;  %v2484_v27 = vadd.f32 %v1672_v1, %v2812_v15  ;;  %v1748_v47 = vadd.f32 %v1743_v35, %v3008_v18  ;;  %v1990_v1 = vld [vmem:[%s3340_s5] ss:$0 sm:$0xff] }
0x13c0   :  { %v2485_v56 = vadd.f32 %v1674_v43, %v2802_v9  ;;  %v1749_v61 = vadd.f32 %v1745_v48, %v2999_v63 }
0x13c1   :  { %v1986_v40 = vmul.f32 -1.442695, %v2484_v27  ;;  %v1984_v59 = vmul.f32 -1.442695, %v1748_v47 }
0x13c2   :  { %2661 = vtanh.f32 %v2485_v56  ;;  %v1985_v60 = vmul.f32 -1.442695, %v1749_v61  ;;  %v1987_v32 = vmul.f32 -1.442695, %v2485_v56  ;;  %v1991_v56 = vld [vmem:[#allocation3] ss:$0 sm:$0xff] }
0x13c3   :  { %2663 = vtanh.f32 %v1749_v61 }
0x13c4   :  { %2665 = vpow2.f32 %v1986_v40 }
0x13c5   :  { %2667 = vpow2.f32 %v1984_v59 }
0x13cc   :  { %v2662_v8 = vpop.eup %2661 }
0x13cd   :  { %1799 = vrot.lane.b32.xlu0 %v2662_v8, %s2725_s1  ;;  %v2664_v21 = vpop.eup %2663 }
0x13ce   :  { %1765 = vrot.lane.b32.xlu1 %v2664_v21, %s2725_s1  ;;  %v2666_v3 = vpop.eup %2665 }
0x13cf   :  { %v1790_v9 = vadd.f32 1.0, %v2666_v3  ;;  %v2668_v19 = vpop.eup %2667 }
0x13d0   :  { %v1756_v28 = vadd.f32 1.0, %v2668_v19 }
0x13d1   :  { %2669 = vrcp.f32 %v1790_v9 }
0x13d2   :  { %2671 = vrcp.f32 %v1756_v28 }
0x13db   :  { %v2670_v34 = vpop.eup %2669 }
0x13dc   :  { %v2672_v44 = vpop.eup %2671  ;;  %v1797_v57 = vmul.f32 %v2670_v34, %v3282_v24 }
0x13dd   :  { %v1763_v22 = vmul.f32 %v2672_v44, %v3286_v62 }
0x143f   :  { %v1800_v31 = vpop.permute.xlu0 %1799 }
0x1440   :  { %v1802_v39 = vmul.f32 %v2670_v34, %v1800_v31  ;;  %v1766_v52 = vpop.permute.xlu1 %1765 }
0x1441   :  { %v1768_v15 = vmul.f32 %v2672_v44, %v1766_v52 }
0x1442   :  { %1804 = vrot.lane.b32.xlu0 %v1802_v39, %s2725_s1 }
0x1443   :  { %1770 = vrot.lane.b32.xlu1 %v1768_v15, %s2725_s1 }
0x14b4   :  { %v1805_v2 = vpop.permute.xlu0 %1804 }
0x14b5   :  { %v1807_v16 = vadd.f32 %v1805_v2, %v1797_v57  ;;  %v1771_v36 = vpop.permute.xlu1 %1770 }
0x14b6   :  { %v1773_v41 = vadd.f32 %v1771_v36, %v1763_v22 }
0x14b7   :  { %2673 = vtanh.f32 %v1807_v16 }
0x14b8   :  { %2675 = vtanh.f32 %v1773_v41 }
0x14b9   :  { %2677 = vpow2.f32 %v1985_v60 }
0x14c1   :  { %v2674_v30 = vpop.eup %2673 }
0x14c2   :  { %1810 = vrot.lane.b32.xlu0 %v2674_v30, %s2725_s1  ;;  %v2676_v55 = vpop.eup %2675 }
0x14c3   :  { %1776 = vrot.lane.b32.xlu1 %v2676_v55, %s2725_s1  ;;  %v2678_v17 = vpop.eup %2677 }
0x14c4   :  { %v1757_v23 = vadd.f32 1.0, %v2678_v17 }
0x14c6   :  { %2679 = vrcp.f32 %v1757_v23 }
0x14c7   :  { %2681 = vpow2.f32 %v1987_v32 }
0x14d0   :  { %v2680_v33 = vpop.eup %2679 }
0x14d1   :  { %v2682_v5 = vpop.eup %2681 }
0x14d2   :  { %v1791_v49 = vadd.f32 1.0, %v2682_v5 }
0x14d4   :  { %2683 = vrcp.f32 %v1791_v49 }
0x14de   :  { %v2684_v53 = vpop.eup %2683 }
0x1534   :  { %v1811_v14 = vpop.permute.xlu0 %1810 }
0x1535   :  { %v1777_v0 = vpop.permute.xlu1 %1776  ;;  %v1813_v12 = vmul.f32 %v2684_v53, %v1811_v14 }
0x1536   :  { %v1779_v4 = vmul.f32 %v2680_v33, %v1777_v0 }
0x1538   :  { %1815 = vrot.lane.b32.xlu1 %v1779_v4, %s2725_s1 }
0x15aa   :  { %v1816_v24 = vpop.permute.xlu1 %1815 }
0x15ab   :  { %v1818_v7 = vsel %vm262_vm1, %v1813_v12, %v1816_v24 }
0x15ac   :  { %1884 = vmatmul.mubr.f32.vlgmr.msra.gmra.mrb[14].mxu1 %v1818_v7 }
0x167f   :  { %v1885_v20 = vpop.f32.mrb[14].mxu1 }
0x1680   :  { %v1887_v62 = vpop.f32.mrb[15].mxu1  ;;  %v1890_v38 = vadd.f32 %v1885_v20, %v3008_v18 }
0x1681   :  { %v1891_v58 = vadd.f32 %v1887_v62, %v2999_v63 }
0x1682   :  { %v1988_v6 = vmul.f32 -1.442695, %v1890_v38 }
0x1683   :  { %2685 = vtanh.f32 %v1891_v58  ;;  %v1989_v29 = vmul.f32 -1.442695, %v1891_v58 }
0x1684   :  { %2687 = vpow2.f32 %v1988_v6 }
0x168d   :  { %v2686_v45 = vpop.eup %2685 }
0x168e   :  { %1907 = vrot.lane.b32.xlu0 %v2686_v45, %s2725_s1  ;;  %v2688_v26 = vpop.eup %2687 }
0x168f   :  { %v1898_v42 = vadd.f32 1.0, %v2688_v26 }
0x1691   :  { %2689 = vrcp.f32 %v1898_v42 }
0x169b   :  { %v2690_v13 = vpop.eup %2689 }
0x169c   :  { %v1905_v25 = vmul.f32 %v2690_v13, %v1773_v41 }
0x1700   :  { %v1908_v11 = vpop.permute.xlu0 %1907 }
0x1701   :  { %v1910_v54 = vmul.f32 %v2690_v13, %v1908_v11 }
0x1703   :  { %1912 = vrot.lane.b32.xlu1 %v1910_v54, %s2725_s1 }
0x1775   :  { %v1913_v50 = vpop.permute.xlu1 %1912 }
0x1776   :  { %v1915_v51 = vadd.f32 %v1913_v50, %v1905_v25 }
0x1778   :  { %2691 = vtanh.f32 %v1915_v51 }
0x1779   :  { %2693 = vpow2.f32 %v1989_v29 }
0x1782   :  { %v2692_v63 = vpop.eup %2691 }
0x1783   :  { %1918 = vrot.lane.b32.xlu0 %v2692_v63, %s2725_s1  ;;  %v2694_v18 = vpop.eup %2693 }
0x1784   :  { %v1899_v37 = vadd.f32 1.0, %v2694_v18 }
0x1786   :  { %2695 = vrcp.f32 %v1899_v37 }
0x1790   :  { %v2696_v46 = vpop.eup %2695 }
0x17f5   :  { %v1919_v10 = vpop.permute.xlu0 %1918 }
0x17f6   :  { %v1921_v35 = vmul.f32 %v2696_v46, %v1919_v10 }
0x17f8   :  { %v1929_v43 = vmul.f32 %v1990_v1, %v1921_v35 }
0x17fa   :  { %v1930_v48 = vsel %vm262_vm1, %v1929_v43, 0.0 }
0x17fb   :  { %1931 = vadd.xlane.f32.xlu1 %v1930_v48 }
0x1888   :  { %v1932_v61 = vpop.xlane.xlu1 %1931 }
0x1889   :  { %v1940_v8 = vadd.f32 %v1991_v56, %v1932_v61 }
0x188b   :  { %1942 = vst.msk [vmem:[%s3342_s7] sm:$0xff] %vm1941_vm2, %v1940_v8 }
0x188c   :  { %1947 = vsyncpa [#allocation5], 1 }

</bundles_post_ra>
